<compile_context>
chip_gen: v7x
topology: tpu7x:2x2x1
jax: 0.10.0
libtpu: 0.0.40
codegen_flags: <defaults>
</compile_context>

<pallas_src>
import numpy as np

import jax
import jax.numpy as jnp
from jax.experimental import pallas as pl
from jax.experimental.pallas import tpu as pltpu


def _round_up(x, m):
    return ((x + m - 1) // m) * m


def _vmem_capacity_bytes():
    try:
        info = pltpu.get_tpu_info()
        cap = int(getattr(info, "vmem_capacity_bytes", 0) or 0)
        if cap > 0:
            return cap
    except Exception:
        pass
    return 128 * 2**20


def _cores_per_chip():
    try:
        dev = jax.devices()[0]
        for attr in ("num_cores", "num_cores_per_chip", "core_count"):
            val = getattr(dev, attr, None)
            if isinstance(val, int) and 1 <= val <= 8:
                return val
        kind = dev.device_kind.lower()
        if ("v4" in kind) or ("v5p" in kind) or ("7" in kind):
            return 2
    except Exception:
        pass
    return 1


def _supports_bf16_elementwise():
    # v5e (and older) have no bf16 VPU/EUP paths -> keep elementwise f32 there.
    try:
        kind = jax.devices()[0].device_kind.lower()
        for bad in ("v2", "v3", "v4", "v5"):
            if bad in kind:
                return False
    except Exception:
        pass
    return True


def _make_kernel(ew_dtype):
    def kernel(enc_ref, hid_ref, wenc_ref, wdec_ref, b_ref, v_ref, mbias_ref,
               out_ref, hid_proj_ref):
        # enc_ref  : [ts, TB, Eh]   encoder-output chunk (seq-first)
        # hid_ref  : [TB, Dh]       decoder hidden state (f32)
        # wenc_ref : [Eh, Dh]       encoder half of attn.weight, transposed
        # wdec_ref : [Dh, Dh]       decoder half of attn.weight, transposed (f32)
        # b_ref    : [1, Dh]        attn.bias (f32)
        # v_ref    : [1, Dh]        v parameter (f32)
        # mbias_ref: [TB, ts]       additive mask bias chunk (f32, -1e10 / 0)
        # out_ref  : [TB, S_pad]    resident across the S axis; final softmax
        # hid_proj_ref : [TB, Dh]   f32 VMEM scratch (hidden projection)
        s_idx = pl.program_id(1)
        n_s = pl.num_programs(1)
        ts, tb, eh = enc_ref.shape
        dh = wenc_ref.shape[1]

        # Hidden projection + bias: constant over src_len -> once per batch tile.
        @pl.when(s_idx == 0)
        def _():
            hid_proj_ref[...] = (
                jnp.dot(hid_ref[...], wdec_ref[...],
                        preferred_element_type=jnp.float32)
                + b_ref[...]
            )

        # Encoder projection: flatten (ts, TB) -> M so the MXU sees one matmul.
        # TB is a multiple of the sublane tile of enc's dtype, so this reshape
        # is layout-preserving.
        enc2 = enc_ref[...].reshape(ts * tb, eh)                  # [(ts*TB), Eh]
        enc_proj = jnp.dot(enc2, wenc_ref[...],
                           preferred_element_type=jnp.float32)    # [(ts*TB), Dh]
        pre = enc_proj.reshape(ts, tb, dh) + hid_proj_ref[...][None, :, :]

        # Heavy elementwise math (tanh, v-multiply) in ew_dtype (bf16 on
        # v6e/v7x when the caller opted into reduced precision); the Dh
        # reduction and everything downstream stay f32.
        energy = jnp.tanh(pre.astype(ew_dtype))                   # [ts, TB, Dh]
        v_ew = v_ref[...].astype(ew_dtype)                        # [1, Dh]
        prod = (energy * v_ew[None, :, :]).astype(jnp.float32)
        score_sb = jnp.sum(prod, axis=-1)                         # [ts, TB] f32
        score = jnp.transpose(score_sb, (1, 0))                   # [TB, ts] (XLU)

        # Additive mask bias, then stash this chunk into the resident output
        # block (lane-aligned dynamic slice; ts is a multiple of 128).
        start = pl.multiple_of(s_idx * ts, ts)
        out_ref[:, pl.ds(start, ts)] = score + mbias_ref[...]

        # Softmax over the full (padded) src_len once all chunks are in.
        @pl.when(s_idx == n_s - 1)
        def _():
            sc = out_ref[...]                                     # [TB, S_pad]
            m = jnp.max(sc, axis=-1, keepdims=True)
            e = jnp.exp(sc - m)
            denom = jnp.sum(e, axis=-1, keepdims=True)
            out_ref[...] = e * pl.reciprocal(denom, approx=True)

    return kernel


def attention_forward(hidden, encoder_outputs, mask, W, bias, v,
                      compute_dtype=None, ew_dtype=None):
    """Matches Attention.forward semantics of the PyTorch module."""
    src_len, batch, enc_hid = encoder_outputs.shape
    dec_hid = hidden.shape[1]

    if compute_dtype is None:
        compute_dtype = encoder_outputs.dtype
    esize = int(np.dtype(compute_dtype).itemsize)

    if ew_dtype is None:
        ew_dtype = (jnp.bfloat16
                    if (esize == 2 and _supports_bf16_elementwise())
                    else jnp.float32)
    ew_size = int(np.dtype(ew_dtype).itemsize)

    # ---- split the linear: first dec_hid input features act on `hidden`,
    # the remaining enc_hid act on the encoder outputs (reproduces
    # cat((hidden, enc), dim=2) @ W.T without materializing the concat).
    w_dec_t = jnp.asarray(W[:, :dec_hid].T, dtype=jnp.float32)      # [Dh, Dh]
    w_enc_t = jnp.asarray(W[:, dec_hid:].T, dtype=compute_dtype)    # [Eh, Dh]
    bias2 = jnp.asarray(bias, dtype=jnp.float32)[None, :]           # [1, Dh]
    v2 = jnp.asarray(v, dtype=jnp.float32)[None, :]                 # [1, Dh]

    enc = encoder_outputs.astype(compute_dtype)    # seq-first, no transpose
    hid = hidden.astype(jnp.float32)
    # Additive mask bias (one VPU add in-kernel instead of compare+select).
    mbias = jnp.where(mask == 0, jnp.float32(-1e10), jnp.float32(0.0))

    # ---- hardware-aware tiling ------------------------------------------
    cap = _vmem_capacity_bytes()
    vmem_limit = int(min(0.78 * cap, 100 * 2**20))
    vmem_limit = max(vmem_limit, 32 * 2**20)
    big_vmem = cap >= 96 * 2**20

    sublane = 16 if esize == 2 else 8                 # sublane tile of enc dtype
    b_al = _round_up(batch, sublane)

    tb_pref = 32 if big_vmem else 16
    tb = min(tb_pref, b_al)
    tb = max(sublane, (tb // sublane) * sublane)
    b_pad = _round_up(b_al, tb)

    # Multi-TensorCore chips (v7x): make sure the "parallel" batch axis has
    # at least two tiles so both cores get work.
    if _cores_per_chip() >= 2 and (b_pad // tb) == 1 and tb >= 2 * sublane:
        tb = max(sublane, (tb // 2) // sublane * sublane)
        b_pad = _round_up(b_al, tb)

    # Pad src_len to a multiple of 128 (lane-dense output / mask / transpose).
    s_pad = _round_up(src_len, 128)
    ts = 256 if (s_pad % 256 == 0) else 128
    ts = min(ts, s_pad)

    def footprint(ts_, tb_):
        blocks = (2 * ts_ * tb_ * enc_hid * esize          # enc chunk (dbl buf)
                  + 2 * tb_ * ts_ * 4                      # mask-bias chunk
                  + 2 * tb_ * dec_hid * 4                  # hidden block
                  + 2 * tb_ * s_pad * 4                    # resident out block
                  + 2 * (enc_hid * dec_hid * esize
                         + dec_hid * dec_hid * 4
                         + 2 * dec_hid * 4))               # weights / bias / v
        temps = ts_ * tb_ * dec_hid * (4 + 2 * ew_size)    # enc_proj/energy/prod
        scratch = tb_ * dec_hid * 4
        return blocks + temps + scratch

    while footprint(ts, tb) > 0.6 * vmem_limit and (ts > 128 or tb > sublane):
        if ts > 128:
            ts //= 2
        else:
            tb = max(sublane, (tb // 2) // sublane * sublane)
            b_pad = _round_up(b_al, tb)

    # ---- padding ----------------------------------------------------------
    pad_b = b_pad - batch
    pad_s = s_pad - src_len
    if pad_s or pad_b:
        enc = jnp.pad(enc, ((0, pad_s), (0, pad_b), (0, 0)))
        hid = jnp.pad(hid, ((0, pad_b), (0, 0)))
        mbias = jnp.pad(mbias, ((0, pad_b), (0, pad_s)),
                        constant_values=-1e10)

    grid = (b_pad // tb, s_pad // ts)

    out = pl.pallas_call(
        _make_kernel(ew_dtype),
        out_shape=jax.ShapeDtypeStruct((b_pad, s_pad), jnp.float32),
        grid_spec=pltpu.PrefetchScalarGridSpec(
            num_scalar_prefetch=0,
            grid=grid,
            in_specs=[
                pl.BlockSpec((ts, tb, enc_hid), lambda i, s: (s, i, 0)),
                pl.BlockSpec((tb, dec_hid), lambda i, s: (i, 0)),
                pl.BlockSpec((enc_hid, dec_hid), lambda i, s: (0, 0)),
                pl.BlockSpec((dec_hid, dec_hid), lambda i, s: (0, 0)),
                pl.BlockSpec((1, dec_hid), lambda i, s: (0, 0)),
                pl.BlockSpec((1, dec_hid), lambda i, s: (0, 0)),
                pl.BlockSpec((tb, ts), lambda i, s: (i, s)),
            ],
            out_specs=pl.BlockSpec((tb, s_pad), lambda i, s: (i, 0)),
            scratch_shapes=[pltpu.VMEM((tb, dec_hid), jnp.float32)],
        ),
        compiler_params=pltpu.CompilerParams(
            dimension_semantics=("parallel", "arbitrary"),
            vmem_limit_bytes=vmem_limit,
        ),
    )(enc, hid, w_enc_t, w_dec_t, bias2, v2, mbias)

    return out[:batch, :src_len]                                    # [B, S]


def _reference(hidden, encoder_outputs, mask, W, bias, v):
    """Pure-JAX transcription of the PyTorch forward, for verification."""
    src_len, batch, _ = encoder_outputs.shape
    hid_rep = jnp.broadcast_to(hidden[:, None, :],
                               (batch, src_len, hidden.shape[1]))
    enc_b = jnp.transpose(encoder_outputs, (1, 0, 2))
    attn_input = jnp.concatenate([hid_rep, enc_b], axis=2)
    energy = jnp.tanh(attn_input @ W.T + bias)                      # [B, S, Dh]
    attention = jnp.einsum("d,bsd->bs", v, energy)                  # [B, S]
    attention = jnp.where(mask == 0, -1e10, attention)
    return jax.nn.softmax(attention, axis=1)


if __name__ == "__main__":
    batch, src_len = 2, 8
    enc_hid, dec_hid = 32, 32
    in_dim = enc_hid + dec_hid

    key = jax.random.PRNGKey(0)
    k_hid, k_enc, k_w, k_b, k_v = jax.random.split(key, 5)

    hidden = jax.random.normal(k_hid, (batch, dec_hid), dtype=jnp.float32)
    encoder_outputs = jax.random.normal(
        k_enc, (src_len, batch, enc_hid), dtype=jnp.float32)
    # mask: 1 = keep, 0 = masked out (mask a few trailing positions of row 1)
    mask = jnp.ones((batch, src_len), dtype=jnp.int32)
    mask = mask.at[1, 5:].set(0)

    W = jax.random.uniform(k_w, (dec_hid, in_dim), dtype=jnp.float32,
                           minval=-0.1, maxval=0.1)
    bias = jax.random.uniform(k_b, (dec_hid,), dtype=jnp.float32,
                              minval=-0.1, maxval=0.1)
    v = jax.random.uniform(k_v, (dec_hid,), dtype=jnp.float32)

    ref = _reference(hidden, encoder_outputs, mask, W, bias, v)

    attn_fn = jax.jit(attention_forward,
                      static_argnames=("compute_dtype", "ew_dtype"))

    # f32 path (tolerance leaves room for the approximate EUP reciprocal).
    out = jax.block_until_ready(
        attn_fn(hidden, encoder_outputs, mask, W, bias, v))
    assert out.shape == (batch, src_len)
    assert jnp.allclose(out, ref, atol=5e-3, rtol=5e-3), (out, ref)
    assert jnp.allclose(jnp.sum(out, axis=1), 1.0, atol=5e-3)

    # bf16 inputs (halves enc DMA bytes; bf16 tanh on v6e/v7x; f32 accumulate).
    out_bf16 = jax.block_until_ready(
        attn_fn(hidden, encoder_outputs, mask, W, bias, v,
                compute_dtype=jnp.bfloat16))
    assert out_bf16.shape == (batch, src_len)
    assert jnp.allclose(out_bf16, ref, atol=3e-2, rtol=0), (out_bf16, ref)

    print("KERNEL_OK")
</pallas_src>

<mosaic_0001>
module attributes {stable_mosaic.version = 11 : i64} {
  func.func @kernel(%arg0: i32, %arg1: i32, %arg2: memref<128x8x32xf32, #tpu.memory_space<vmem>>, %arg3: memref<8x32xf32, #tpu.memory_space<vmem>>, %arg4: memref<32x32xf32, #tpu.memory_space<vmem>>, %arg5: memref<32x32xf32, #tpu.memory_space<vmem>>, %arg6: memref<1x32xf32, #tpu.memory_space<vmem>>, %arg7: memref<1x32xf32, #tpu.memory_space<vmem>>, %arg8: memref<8x128xf32, #tpu.memory_space<vmem>>, %arg9: memref<8x128xf32, #tpu.memory_space<vmem>>, %arg10: memref<8x32xf32, #tpu.memory_space<vmem>>) attributes {dimension_semantics = [#tpu.dimension_semantics<parallel>, #tpu.dimension_semantics<arbitrary>], iteration_bounds = array<i64: 1, 1>, scalar_prefetch = 0 : i64, scratch_operands = 1 : i64, tpu.core_type = #tpu.core_type<tc>, window_params = [{transform_indices = @transform_0, window_bounds = array<i64: 128, 8, 32>}, {transform_indices = @transform_1, window_bounds = array<i64: 8, 32>}, {pipeline_mode = #tpu.pipeline_mode<synchronous>, transform_indices = @transform_2, window_bounds = array<i64: 32, 32>}, {pipeline_mode = #tpu.pipeline_mode<synchronous>, transform_indices = @transform_3, window_bounds = array<i64: 32, 32>}, {pipeline_mode = #tpu.pipeline_mode<synchronous>, transform_indices = @transform_4, window_bounds = array<i64: 1, 32>}, {pipeline_mode = #tpu.pipeline_mode<synchronous>, transform_indices = @transform_5, window_bounds = array<i64: 1, 32>}, {transform_indices = @transform_6, window_bounds = array<i64: 8, 128>}, {transform_indices = @transform_7, window_bounds = array<i64: 8, 128>}]} {
    %c0_i32 = arith.constant 0 : i32
    %0 = arith.cmpi eq, %arg1, %c0_i32 : i32
    %1 = arith.extui %0 : i1 to i32
    %c0_i32_0 = arith.constant 0 : i32
    %2 = arith.cmpi ne, %1, %c0_i32_0 : i32
    scf.if %2 {
      %c0_15 = arith.constant 0 : index
      %c0_16 = arith.constant 0 : index
      %28 = vector.load %arg3[%c0_15, %c0_16] : memref<8x32xf32, #tpu.memory_space<vmem>>, vector<8x32xf32>
      %c0_17 = arith.constant 0 : index
      %c0_18 = arith.constant 0 : index
      %29 = vector.load %arg5[%c0_17, %c0_18] : memref<32x32xf32, #tpu.memory_space<vmem>>, vector<32x32xf32>
      %cst_19 = arith.constant dense<0.000000e+00> : vector<8x32xf32>
      %30 = tpu.matmul %28, %29, %cst_19 {dimension_numbers = #tpu.dot_dimension_numbers<[1], [0], [0], [1], [0, 0, 1, 1], [], []>} : vector<8x32xf32>, vector<32x32xf32>, vector<8x32xf32> -> vector<8x32xf32>
      %c0_20 = arith.constant 0 : index
      %c0_21 = arith.constant 0 : index
      %31 = vector.load %arg6[%c0_20, %c0_21] : memref<1x32xf32, #tpu.memory_space<vmem>>, vector<1x32xf32>
      %32 = vector.broadcast %31 : vector<1x32xf32> to vector<8x32xf32>
      %33 = arith.addf %30, %32 : vector<8x32xf32>
      %c0_22 = arith.constant 0 : index
      %c0_23 = arith.constant 0 : index
      %34 = vector.load %arg10[%c0_22, %c0_23] : memref<8x32xf32, #tpu.memory_space<vmem>>, vector<8x32xf32>
      tpu.vector_store %arg10[%c0_22, %c0_23], %33 {strides = array<i32>} : memref<8x32xf32, #tpu.memory_space<vmem>>, vector<8x32xf32>,
    } else {
    }
    %c0 = arith.constant 0 : index
    %c0_1 = arith.constant 0 : index
    %c0_2 = arith.constant 0 : index
    %3 = vector.load %arg2[%c0, %c0_1, %c0_2] : memref<128x8x32xf32, #tpu.memory_space<vmem>>, vector<128x8x32xf32>
    %4 = vector.shape_cast %3 : vector<128x8x32xf32> to vector<1024x32xf32>
    %c0_3 = arith.constant 0 : index
    %c0_4 = arith.constant 0 : index
    %5 = vector.load %arg4[%c0_3, %c0_4] : memref<32x32xf32, #tpu.memory_space<vmem>>, vector<32x32xf32>
    %cst = arith.constant dense<0.000000e+00> : vector<1024x32xf32>
    %6 = tpu.matmul %4, %5, %cst {dimension_numbers = #tpu.dot_dimension_numbers<[1], [0], [0], [1], [0, 0, 1, 1], [], []>} : vector<1024x32xf32>, vector<32x32xf32>, vector<1024x32xf32> -> vector<1024x32xf32>
    %7 = vector.shape_cast %6 : vector<1024x32xf32> to vector<128x8x32xf32>
    %c0_5 = arith.constant 0 : index
    %c0_6 = arith.constant 0 : index
    %8 = vector.load %arg10[%c0_5, %c0_6] : memref<8x32xf32, #tpu.memory_space<vmem>>, vector<8x32xf32>
    %9 = vector.shape_cast %8 : vector<8x32xf32> to vector<1x8x32xf32>
    %10 = vector.broadcast %9 : vector<1x8x32xf32> to vector<128x8x32xf32>
    %11 = arith.addf %7, %10 : vector<128x8x32xf32>
    %12 = math.tanh %11 : vector<128x8x32xf32>
    %c0_7 = arith.constant 0 : index
    %c0_8 = arith.constant 0 : index
    %13 = vector.load %arg7[%c0_7, %c0_8] : memref<1x32xf32, #tpu.memory_space<vmem>>, vector<1x32xf32>
    %14 = vector.shape_cast %13 : vector<1x32xf32> to vector<1x1x32xf32>
    %15 = vector.broadcast %14 : vector<1x1x32xf32> to vector<128x8x32xf32>
    %16 = arith.mulf %12, %15 : vector<128x8x32xf32>
    %cst_9 = arith.constant dense<0.000000e+00> : vector<128x8xf32>
    %17 = vector.multi_reduction <add>, %16, %cst_9 [2] : vector<128x8x32xf32> to vector<128x8xf32>
    %18 = tpu.transpose %17, [1, 0] : vector<128x8xf32> -> vector<8x128xf32>
    %c128_i32 = arith.constant 128 : i32
    %19 = arith.muli %arg1, %c128_i32 : i32
    %20 = tpu.assume_multiple %19, 128 : i32
    %c0_10 = arith.constant 0 : index
    %c0_11 = arith.constant 0 : index
    %21 = vector.load %arg8[%c0_10, %c0_11] : memref<8x128xf32, #tpu.memory_space<vmem>>, vector<8x128xf32>
    %22 = arith.addf %18, %21 : vector<8x128xf32>
    %c0_12 = arith.constant 0 : index
    %23 = arith.index_cast %20 : i32 to index
    %24 = vector.load %arg9[%c0_12, %23] : memref<8x128xf32, #tpu.memory_space<vmem>>, vector<8x128xf32>
    tpu.vector_store %arg9[%c0_12, %23], %22 {strides = array<i32>} : memref<8x128xf32, #tpu.memory_space<vmem>>, vector<8x128xf32>,
    %c0_i32_13 = arith.constant 0 : i32
    %25 = arith.cmpi eq, %arg1, %c0_i32_13 : i32
    %26 = arith.extui %25 : i1 to i32
    %c0_i32_14 = arith.constant 0 : i32
    %27 = arith.cmpi ne, %26, %c0_i32_14 : i32
    scf.if %27 {
      %c0_15 = arith.constant 0 : index
      %c0_16 = arith.constant 0 : index
      %28 = vector.load %arg9[%c0_15, %c0_16] : memref<8x128xf32, #tpu.memory_space<vmem>>, vector<8x128xf32>
      %cst_17 = arith.constant dense<0xFF800000> : vector<8xf32>
      %29 = vector.multi_reduction <maximumf>, %28, %cst_17 [1] : vector<8x128xf32> to vector<8xf32>
      %30 = vector.shape_cast %29 : vector<8xf32> to vector<8x1xf32>
      %31 = vector.broadcast %30 : vector<8x1xf32> to vector<8x128xf32>
      %32 = arith.subf %28, %31 : vector<8x128xf32>
      %33 = math.exp %32 : vector<8x128xf32>
      %cst_18 = arith.constant dense<0.000000e+00> : vector<8xf32>
      %34 = vector.multi_reduction <add>, %33, %cst_18 [1] : vector<8x128xf32> to vector<8xf32>
      %35 = vector.shape_cast %34 : vector<8xf32> to vector<8x1xf32>
      %36 = tpu.reciprocal %35 {approx = true} : vector<8x1xf32> -> vector<8x1xf32>
      %37 = vector.broadcast %36 : vector<8x1xf32> to vector<8x128xf32>
      %38 = arith.mulf %33, %37 : vector<8x128xf32>
      %c0_19 = arith.constant 0 : index
      %c0_20 = arith.constant 0 : index
      %39 = vector.load %arg9[%c0_19, %c0_20] : memref<8x128xf32, #tpu.memory_space<vmem>>, vector<8x128xf32>
      tpu.vector_store %arg9[%c0_19, %c0_20], %38 {strides = array<i32>} : memref<8x128xf32, #tpu.memory_space<vmem>>, vector<8x128xf32>,
    } else {
    }
    return
  }
  func.func @transform_0(%arg0: i32, %arg1: i32) -> (i32, i32, i32) {
    %c0_i32 = arith.constant 0 : i32
    %c0_i32_0 = arith.constant 0 : i32
    return %arg1, %arg0, %c0_i32 : i32, i32, i32
  }
  func.func @transform_1(%arg0: i32, %arg1: i32) -> (i32, i32) {
    %c0_i32 = arith.constant 0 : i32
    %c0_i32_0 = arith.constant 0 : i32
    return %arg0, %c0_i32 : i32, i32
  }
  func.func @transform_2(%arg0: i32, %arg1: i32) -> (i32, i32) {
    %c0_i32 = arith.constant 0 : i32
    %c0_i32_0 = arith.constant 0 : i32
    %c0_i32_1 = arith.constant 0 : i32
    return %c0_i32, %c0_i32_0 : i32, i32
  }
  func.func @transform_3(%arg0: i32, %arg1: i32) -> (i32, i32) {
    %c0_i32 = arith.constant 0 : i32
    %c0_i32_0 = arith.constant 0 : i32
    %c0_i32_1 = arith.constant 0 : i32
    return %c0_i32, %c0_i32_0 : i32, i32
  }
  func.func @transform_4(%arg0: i32, %arg1: i32) -> (i32, i32) {
    %c0_i32 = arith.constant 0 : i32
    %c0_i32_0 = arith.constant 0 : i32
    %c0_i32_1 = arith.constant 0 : i32
    return %c0_i32, %c0_i32_0 : i32, i32
  }
  func.func @transform_5(%arg0: i32, %arg1: i32) -> (i32, i32) {
    %c0_i32 = arith.constant 0 : i32
    %c0_i32_0 = arith.constant 0 : i32
    %c0_i32_1 = arith.constant 0 : i32
    return %c0_i32, %c0_i32_0 : i32, i32
  }
  func.func @transform_6(%arg0: i32, %arg1: i32) -> (i32, i32) {
    %c0_i32 = arith.constant 0 : i32
    return %arg0, %arg1 : i32, i32
  }
  func.func @transform_7(%arg0: i32, %arg1: i32) -> (i32, i32) {
    %c0_i32 = arith.constant 0 : i32
    %c0_i32_0 = arith.constant 0 : i32
    return %arg0, %c0_i32 : i32, i32
  }
}

</mosaic_0001>

<bundles_post_ra>
// kernel: attention_forward.1
= control target key start
LH: loop header
LB: loop body
LE: loop exit
PB: predicated region body
PF: predicated region fallthrough
CT: control target
= control target key end

     0   :  { %12 = vsyncpa [#allocation4], 0  ;;  %s5364_s0 = inlined_call_operand.hbm [shape: f32[128,8,32], index: 0, kind: input, shape index: {}]   ;;  %s5365_s1 = inlined_call_operand.hbm [shape: f32[8,32], index: 1, kind: input, shape index: {}]   ;;  %s5366_s2 = inlined_call_operand.hbm [shape: f32[32,32], index: 2, kind: input, shape index: {}]   ;;  %s5367_s3 = inlined_call_operand.hbm [shape: f32[32,32], index: 3, kind: input, shape index: {}]   ;;  %s5368_s4 = inlined_call_operand.hbm [shape: f32[1,32], index: 4, kind: input, shape index: {}]   ;;  %s5369_s5 = inlined_call_operand.hbm [shape: f32[1,32], index: 5, kind: input, shape index: {}]   ;;  %s5370_s6 = inlined_call_operand.hbm [shape: f32[8,128], index: 6, kind: input, shape index: {}]   ;;  %s5371_s7 = inlined_call_operand.hbm [shape: f32[8,128], index: 7, kind: output, shape index: {}]  }
   0x1   :  { %13 = vsyncpa [#allocation7], 0 }
   0x2   :  { %14 = vsyncpa [#allocation10], 0 }
   0x3   :  { %15 = vsyncpa [#allocation13], 0 }
   0x4   :  { %16 = vsyncpa [#allocation5], 0  ;;  %s4010_s24 = smov [#allocation6]   ;;  %s3824_s28 = scalar_lea.hbm %s5365_s1, 128 }
   0x5   :  { %s35_s25 = sshll.u32 %s4010_s24, 4  ;;  %p3825_p0 = scmp.ne.s32.totalorder %s5365_s1, %s3824_s28  ;;  %s36_s25 = int_to_ptr.vmem [resolvable:$true] %s35_s25 }
   0x6   :  { %p3828_p1 = scmp.lt.u32.totalorder %s3824_s28, %s5365_s1 }
   0x8   :  { %p3830_p2 = pnand %p3828_p1, %p3825_p0 }
   0xa   :  { %3833 = shalt.err (!%p3830_p2)
}
   0xb   :  { %s3834_s10 = scalar_lea.vmem %s36_s25, 128  ;;  %p3839_p4 = scmp.lt.s32.totalorder %s36_s25, %s36_s25 }
   0xc   :  { %p3835_p3 = scmp.ne.s32.totalorder %s36_s25, %s3834_s10  ;;  %p3840_p5 = scmp.lt.s32.totalorder %s3834_s10, %s3834_s10 }
   0xe   :  { %p3841_p6 = por %p3840_p5, %p3839_p4 }
  0x10   :  { %p3842_p7 = pnand %p3841_p6, %p3835_p3 }
  0x12   :  { %3845 = shalt.err (!%p3842_p7)
}
  0x13   :  { %38 = dma.hbm_to_vmem [thread:$0]  %s5365_s1, 128, %s36_s25, [#allocation7]  }
  0x14   :  { %s4011_s13 = smov [#allocation9]   ;;  %s4012_s15 = smov [#allocation12]  }
  0x15   :  { %s56_s14 = sshll.u32 %s4011_s13, 4  ;;  %s79_s16 = sshll.u32 %s4012_s15, 4  ;;  %s57_s14 = int_to_ptr.vmem [resolvable:$true] %s56_s14  ;;  %s80_s16 = int_to_ptr.vmem [resolvable:$true] %s79_s16 }
  0x16   :  { %s3846_s19 = scalar_lea.hbm %s5367_s3, 512 }
  0x17   :  { %p3847_p8 = scmp.ne.s32.totalorder %s5367_s3, %s3846_s19  ;;  %p3850_p9 = scmp.lt.u32.totalorder %s3846_s19, %s5367_s3 }
  0x19   :  { %p3852_p10 = pnand %p3850_p9, %p3847_p8 }
  0x1b   :  { %3855 = shalt.err (!%p3852_p10)
}
  0x1c   :  { %s3856_s1 = scalar_lea.vmem %s57_s14, 512  ;;  %p3861_p12 = scmp.lt.s32.totalorder %s57_s14, %s57_s14 }
  0x1d   :  { %p3857_p11 = scmp.ne.s32.totalorder %s57_s14, %s3856_s1  ;;  %p3862_p13 = scmp.lt.s32.totalorder %s3856_s1, %s3856_s1 }
  0x1f   :  { %p3863_p0 = por %p3862_p13, %p3861_p12 }
  0x21   :  { %p3864_p1 = pnand %p3863_p0, %p3857_p11 }
  0x23   :  { %3867 = shalt.err (!%p3864_p1)
}
  0x24   :  { %s4013_s24 = smov 128   ;;  %s4014_s25 = smov 8  }
  0x25   :  { %62 = dma.hbm_to_vmem [thread:$0]  %s5367_s3, 512, %s57_s14, [#allocation10], %s4013_s24, %s4013_s24, %s4014_s25  }
  0x26   :  { %s3868_s30 = scalar_lea.hbm %s5369_s5, 16 }
  0x27   :  { %p3869_p2 = scmp.ne.s32.totalorder %s5369_s5, %s3868_s30  ;;  %p3872_p3 = scmp.lt.u32.totalorder %s3868_s30, %s5369_s5 }
  0x29   :  { %p3874_p4 = pnand %p3872_p3, %p3869_p2 }
  0x2b   :  { %3877 = shalt.err (!%p3874_p4)
}
  0x2c   :  { %s3878_s12 = scalar_lea.vmem %s80_s16, 16  ;;  %s3882_s13 = scalar_lea.vmem %s80_s16, 32 }
  0x2d   :  { %p3879_p5 = scmp.ne.s32.totalorder %s80_s16, %s3878_s12  ;;  %p3883_p6 = scmp.lt.s32.totalorder %s80_s16, %s80_s16 }
  0x2e   :  { %p3884_p7 = scmp.lt.s32.totalorder %s3882_s13, %s3878_s12 }
  0x30   :  { %p3885_p8 = por %p3884_p7, %p3883_p6 }
  0x32   :  { %p3886_p9 = pnand %p3885_p8, %p3879_p5 }
  0x34   :  { %3889 = shalt.err (!%p3886_p9)
}
  0x35   :  { %82 = dma.hbm_to_vmem [thread:$0]  %s5369_s5, 16, %s80_s16, [#allocation13]  }
  0x36   :  { %s4015_s15 = smov [#allocation3]   ;;  %s4016_s18 = smov [#allocation8]  }
  0x37   :  { %s22_s17 = sshll.u32 %s4015_s15, 4  ;;  %s44_s19 = sshll.u32 %s4016_s18, 4  ;;  %s23_s17 = int_to_ptr.vmem [resolvable:$true] %s22_s17  ;;  %s45_s19 = int_to_ptr.vmem [resolvable:$true] %s44_s19 }
  0x38   :  { %s3890_s22 = scalar_lea.hbm %s5364_s0, 16384 }
  0x39   :  { %p3891_p10 = scmp.ne.s32.totalorder %s5364_s0, %s3890_s22  ;;  %p3894_p11 = scmp.lt.u32.totalorder %s3890_s22, %s5364_s0 }
  0x3b   :  { %p3896_p12 = pnand %p3894_p11, %p3891_p10 }
  0x3d   :  { %3899 = shalt.err (!%p3896_p12)
}
  0x3e   :  { %s3900_s5 = scalar_lea.vmem %s23_s17, 16384  ;;  %p3905_p0 = scmp.lt.s32.totalorder %s23_s17, %s23_s17 }
  0x3f   :  { %p3901_p13 = scmp.ne.s32.totalorder %s23_s17, %s3900_s5  ;;  %p3906_p1 = scmp.lt.s32.totalorder %s3900_s5, %s3900_s5 }
  0x41   :  { %p3907_p2 = por %p3906_p1, %p3905_p0 }
  0x43   :  { %p3908_p3 = pnand %p3907_p2, %p3901_p13 }
  0x45   :  { %3911 = shalt.err (!%p3908_p3)
}
  0x46   :  { %28 = dma.hbm_to_vmem [thread:$0]  %s5364_s0, 16384, %s23_s17, [#allocation4], %s4013_s24, %s4013_s24, %s4014_s25  }
  0x47   :  { %s3912_s8 = scalar_lea.hbm %s5366_s2, 512 }
  0x48   :  { %p3913_p4 = scmp.ne.s32.totalorder %s5366_s2, %s3912_s8  ;;  %p3916_p5 = scmp.lt.u32.totalorder %s3912_s8, %s5366_s2 }
  0x4a   :  { %p3918_p6 = pnand %p3916_p5, %p3913_p4 }
  0x4c   :  { %3921 = shalt.err (!%p3918_p6)
}
  0x4d   :  { %s3922_s13 = scalar_lea.vmem %s45_s19, 512  ;;  %p3927_p8 = scmp.lt.s32.totalorder %s45_s19, %s45_s19 }
  0x4e   :  { %p3923_p7 = scmp.ne.s32.totalorder %s45_s19, %s3922_s13  ;;  %p3928_p9 = scmp.lt.s32.totalorder %s3922_s13, %s3922_s13 }
  0x50   :  { %p3929_p10 = por %p3928_p9, %p3927_p8 }
  0x52   :  { %p3930_p11 = pnand %p3929_p10, %p3923_p7 }
  0x54   :  { %3933 = shalt.err (!%p3930_p11)
}
  0x55   :  { %50 = dma.hbm_to_vmem [thread:$0]  %s5366_s2, 512, %s45_s19, [#allocation7], %s4013_s24, %s4013_s24, %s4014_s25  }
  0x56   :  { %s4017_s14 = smov [#allocation11]   ;;  %s4018_s17 = smov [#allocation14]  }
  0x57   :  { %s69_s15 = sshll.u32 %s4017_s14, 4  ;;  %s89_s18 = sshll.u32 %s4018_s17, 4  ;;  %s70_s15 = int_to_ptr.vmem [resolvable:$true] %s69_s15  ;;  %s90_s18 = int_to_ptr.vmem [resolvable:$true] %s89_s18 }
  0x58   :  { %s3934_s22 = scalar_lea.hbm %s5368_s4, 16 }
  0x59   :  { %p3935_p12 = scmp.ne.s32.totalorder %s5368_s4, %s3934_s22  ;;  %p3938_p13 = scmp.lt.u32.totalorder %s3934_s22, %s5368_s4 }
  0x5b   :  { %p3940_p0 = pnand %p3938_p13, %p3935_p12 }
  0x5d   :  { %3943 = shalt.err (!%p3940_p0)
}
  0x5e   :  { %s3944_s2 = scalar_lea.vmem %s70_s15, 16  ;;  %s3948_s24 = scalar_lea.vmem %s70_s15, 32 }
  0x5f   :  { %p3945_p1 = scmp.ne.s32.totalorder %s70_s15, %s3944_s2  ;;  %p3949_p2 = scmp.lt.s32.totalorder %s70_s15, %s70_s15 }
  0x60   :  { %p3950_p3 = scmp.lt.s32.totalorder %s3948_s24, %s3944_s2 }
  0x62   :  { %p3951_p4 = por %p3950_p3, %p3949_p2 }
  0x64   :  { %p3952_p5 = pnand %p3951_p4, %p3945_p1 }
  0x66   :  { %3955 = shalt.err (!%p3952_p5)
}
  0x67   :  { %72 = dma.hbm_to_vmem [thread:$0]  %s5368_s4, 16, %s70_s15, [#allocation10]  }
  0x68   :  { %s3956_s28 = scalar_lea.hbm %s5370_s6, 128 }
  0x69   :  { %p3957_p6 = scmp.ne.s32.totalorder %s5370_s6, %s3956_s28  ;;  %p3960_p7 = scmp.lt.u32.totalorder %s3956_s28, %s5370_s6 }
  0x6b   :  { %p3962_p8 = pnand %p3960_p7, %p3957_p6 }
  0x6d   :  { %3965 = shalt.err (!%p3962_p8)
}
  0x6e   :  { %s3966_s10 = scalar_lea.vmem %s90_s18, 128  ;;  %p3971_p10 = scmp.lt.s32.totalorder %s90_s18, %s90_s18 }
  0x6f   :  { %p3967_p9 = scmp.ne.s32.totalorder %s90_s18, %s3966_s10  ;;  %p3972_p11 = scmp.lt.s32.totalorder %s3966_s10, %s3966_s10 }
  0x71   :  { %p3973_p12 = por %p3972_p11, %p3971_p10 }
  0x73   :  { %p3974_p13 = pnand %p3973_p12, %p3967_p9 }
  0x75   :  { %3977 = shalt.err (!%p3974_p13)
}
  0x76   :  { %92 = dma.hbm_to_vmem [thread:$0]  %s5370_s6, 128, %s90_s18, [#allocation13]  }
  0x77   :  { %4000 = dma.done.wait [#allocation4], 16384  }
  0x78   :  { %4001 = vsyncadd [#allocation4], 4294950912 }
  0x79   :  { %4002 = dma.done.wait [#allocation7], 640  }
  0x7a   :  { %4003 = vsyncadd [#allocation7], 4294966656 }
  0x7b   :  { %4004 = dma.done.wait [#allocation10], 528  }
  0x7c   :  { %4005 = vsyncadd [#allocation10], 4294966768 }
  0x7d   :  { %4006 = dma.done.wait [#allocation13], 144  }
  0x7e   :  { %4007 = vsyncadd [#allocation13], 4294967152  ;;  %v4019_v0 = vmov 0.0|0.0   ;;  %vm4020_vm0 = vmmov 0   ;;  %v4021_v1 = vmov 0.0   ;;  %v119_v2 = vld [vmem:[#allocation9] sm:$0xff] }
  0x7f   :  { %3531 = vmatprep.subr.bf16.mxu0 %v4019_v0  ;;  %3328 = vmatprep.mubr.msk.f32.mxu0 %vm4020_vm0, %v4021_v1  ;;  %v120_v3 = vld [vmem:[#allocation9 + $0x8] sm:$0xff]  ;;  %v333_v4 = vld [vmem:[#allocation8] sm:$0xff]  ;;  %v121_v7 = vld [vmem:[#allocation9 + $0x10] sm:$0xff]  ;;  %vm130_vm1 = vcmask 261120   ;;  %vm2845_vm2 = vcmask 1041409   ;;  %vm2847_vm3 = vcmask 1042434  }
  0x80   :  { %v3532_v5 = vpack.c.bf16 %v120_v3, %v119_v2  ;;  %v334_v6 = vld [vmem:[#allocation8 + $0x8] sm:$0xff]  ;;  %v122_v8 = vld [vmem:[#allocation9 + $0x18] sm:$0xff]  ;;  %v335_v10 = vld [vmem:[#allocation8 + $0x10] sm:$0xff]  ;;  %vm2849_vm4 = vcmask 1043459   ;;  %vm2851_vm5 = vcmask 1044484   ;;  %vm2853_vm6 = vcmask 1045509  }
  0x81   :  { %v3537_v9 = vpack.c.bf16 %v334_v6, %v333_v4  ;;  %v336_v11 = vld [vmem:[#allocation8 + $0x18] sm:$0xff]  ;;  %v3535_v12 = vpack.c.bf16 %v122_v8, %v121_v7  ;;  %v267_v14 = vld [vmem:[#allocation3 + $0x1f0] sm:$0xff]  ;;  %v268_v17 = vld [vmem:[#allocation3 + $0x1f8] sm:$0xff]  ;;  %vm2855_vm7 = vcmask 1046534   ;;  %vm2857_vm8 = vcmask 1047559   ;;  %s4022_s6 = smov [#allocation15]  }
  0x82   :  { %3533 = vmatpush3.bf16.msra.mxu0 %v3532_v5  ;;  %v3541_v13 = vpack.c.bf16 %v336_v11, %v335_v10  ;;  %3432 = vmatprep.mubr.msk.f32.mxu1 %vm130_vm1, %v267_v14  ;;  %v118_v15 = vld [vmem:[#allocation6] sm:$0xff]  ;;  %v270_v19 = vld [vmem:[#allocation3 + $0x208] sm:$0xff]  ;;  %v271_v20 = vld [vmem:[#allocation3 + $0x210] sm:$0xff]  ;;  %s3039_s12 = sshll.u32 %s4022_s6, 4  ;;  %s3040_s12 = int_to_ptr.vmem [resolvable:$true] %s3039_s12 }
  0x83   :  { %3545 = vmatprep.subr.bf16.mxu1 %v3537_v9  ;;  %3534 = vmatprep.subr.bf16.mxu0 %v4019_v0  ;;  %v205_v16 = vld [vmem:[#allocation3] sm:$0xff]  ;;  %v206_v21 = vld [vmem:[#allocation3 + $0x8] sm:$0xff]  ;;  %v207_v22 = vld [vmem:[#allocation3 + $0x10] sm:$0xff]  ;;  %s3978_s13 = scalar_lea.vmem %s3040_s12, 128  ;;  %p3983_p1 = scmp.lt.s32.totalorder %s3040_s12, %s3040_s12 }
  0x84   :  { %3547 = vmatpush3.bf16.msra.mxu1 %v3537_v9  ;;  %v269_v18 = vld [vmem:[#allocation3 + $0x200] sm:$0xff]  ;;  %v272_v23 = vld [vmem:[#allocation3 + $0x218] sm:$0xff]  ;;  %v274_v27 = vld [vmem:[#allocation3 + $0x228] sm:$0xff]  ;;  %p3979_p0 = scmp.ne.s32.totalorder %s3040_s12, %s3978_s13  ;;  %p3984_p2 = scmp.lt.s32.totalorder %s3978_s13, %s3978_s13 }
  0x85   :  { %3546 = vmatprep.subr.bf16.mxu1 %v3541_v13  ;;  %v273_v24 = vld [vmem:[#allocation3 + $0x220] sm:$0xff]  ;;  %v208_v25 = vld [vmem:[#allocation3 + $0x18] sm:$0xff]  ;;  %v275_v28 = vld [vmem:[#allocation3 + $0x230] sm:$0xff] }
  0x86   :  { %3536 = vmatpush3.bf16.msra.mxu0 %v3535_v12  ;;  %v209_v26 = vld [vmem:[#allocation3 + $0x20] sm:$0xff]  ;;  %v210_v29 = vld [vmem:[#allocation3 + $0x28] sm:$0xff]  ;;  %v211_v30 = vld [vmem:[#allocation3 + $0x30] sm:$0xff]  ;;  %p3985_p3 = por %p3984_p2, %p3983_p1 }
  0x87   :  { %3538 = vmatprep.subr.bf16.mxu0 %v3537_v9  ;;  %v276_v31 = vld [vmem:[#allocation3 + $0x238] sm:$0xff]  ;;  %v277_v32 = vld [vmem:[#allocation3 + $0x240] sm:$0xff]  ;;  %v278_v35 = vld [vmem:[#allocation3 + $0x248] sm:$0xff] }
  0x88   :  { %3548 = vmatpush3.bf16.msra.mxu1 %v3541_v13  ;;  %v212_v33 = vld [vmem:[#allocation3 + $0x38] sm:$0xff]  ;;  %v213_v34 = vld [vmem:[#allocation3 + $0x40] sm:$0xff]  ;;  %v279_v36 = vld [vmem:[#allocation3 + $0x250] sm:$0xff]  ;;  %p3986_p4 = pnand %p3985_p3, %p3979_p0 }
  0x89   :  { %3329 = vmatmul.mubr.msk.f32.vlgmr.msra.gmra.mrb[0].mxu0 %vm130_vm1, %v118_v15  ;;  %v214_v37 = vld [vmem:[#allocation3 + $0x48] sm:$0xff]  ;;  %v215_v38 = vld [vmem:[#allocation3 + $0x50] sm:$0xff]  ;;  %v280_v39 = vld [vmem:[#allocation3 + $0x258] sm:$0xff] }
  0x8a   :  { %3540 = vmatpush3.bf16.msra.mxu0 %v3537_v9  ;;  %3339 = vmatprep.mubr.msk.f32.mxu0 %vm130_vm1, %v205_v16  ;;  %v281_v40 = vld [vmem:[#allocation3 + $0x260] sm:$0xff]  ;;  %v216_v41 = vld [vmem:[#allocation3 + $0x58] sm:$0xff]  ;;  %v282_v43 = vld [vmem:[#allocation3 + $0x268] sm:$0xff] }
  0x8b   :  { %3433 = vmatmul.mubr.msk.f32.vlgmr.msra.gmra.mrb[0].mxu1 %vm130_vm1, %v268_v17  ;;  %3542 = vmatprep.subr.bf16.mxu0 %v3541_v13  ;;  %v217_v42 = vld [vmem:[#allocation3 + $0x60] sm:$0xff]  ;;  %v283_v44 = vld [vmem:[#allocation3 + $0x270] sm:$0xff]  ;;  %v218_v45 = vld [vmem:[#allocation3 + $0x68] sm:$0xff] }
  0x8c   :  { %3435 = vmatprep.mubr.msk.f32.mxu1 %vm130_vm1, %v269_v18  ;;  %v219_v46 = vld [vmem:[#allocation3 + $0x70] sm:$0xff]  ;;  %v284_v47 = vld [vmem:[#allocation3 + $0x278] sm:$0xff]  ;;  %v285_v48 = vld [vmem:[#allocation3 + $0x280] sm:$0xff] }
  0x8d   :  { %v220_v49 = vld [vmem:[#allocation3 + $0x78] sm:$0xff]  ;;  %v221_v50 = vld [vmem:[#allocation3 + $0x80] sm:$0xff]  ;;  %v286_v51 = vld [vmem:[#allocation3 + $0x288] sm:$0xff] }
  0x8e   :  { %3544 = vmatpush3.bf16.msra.mxu0 %v3541_v13  ;;  %v287_v52 = vld [vmem:[#allocation3 + $0x290] sm:$0xff]  ;;  %v222_v53 = vld [vmem:[#allocation3 + $0x88] sm:$0xff]  ;;  %v288_v55 = vld [vmem:[#allocation3 + $0x298] sm:$0xff] }
  0x8f   :  { %3436 = vmatmul.mubr.msk.f32.gmra.mrb[2].mxu1 %vm130_vm1, %v270_v19  ;;  %v223_v54 = vld [vmem:[#allocation3 + $0x90] sm:$0xff]  ;;  %v289_v56 = vld [vmem:[#allocation3 + $0x2a0] sm:$0xff]  ;;  %v224_v57 = vld [vmem:[#allocation3 + $0x98] sm:$0xff] }
  0x90   :  { %3438 = vmatprep.mubr.msk.f32.mxu1 %vm130_vm1, %v271_v20  ;;  %v225_v58 = vld [vmem:[#allocation3 + $0xa0] sm:$0xff]  ;;  %v290_v59 = vld [vmem:[#allocation3 + $0x2a8] sm:$0xff]  ;;  %v291_v60 = vld [vmem:[#allocation3 + $0x2b0] sm:$0xff] }
  0x91   :  { %3340 = vmatmul.mubr.msk.f32.vlgmr.msra.gmra.mrb[2].mxu0 %vm130_vm1, %v206_v21  ;;  %v226_v61 = vld [vmem:[#allocation3 + $0xa8] sm:$0xff]  ;;  %v227_v62 = vld [vmem:[#allocation3 + $0xb0] sm:$0xff]  ;;  %v292_v63 = vld [vmem:[#allocation3 + $0x2b8] sm:$0xff] }
  0x92   :  { %3342 = vmatprep.mubr.msk.f32.mxu0 %vm130_vm1, %v207_v22  ;;  %v293_v0 = vld [vmem:[#allocation3 + $0x2c0] sm:$0xff]  ;;  %v228_v1 = vld [vmem:[#allocation3 + $0xb8] sm:$0xff]  ;;  %v294_v3 = vld [vmem:[#allocation3 + $0x2c8] sm:$0xff] }
  0x93   :  { %3439 = vmatmul.mubr.msk.f32.gmra.mrb[4].mxu1 %vm130_vm1, %v272_v23  ;;  %v229_v2 = vld [vmem:[#allocation3 + $0xc0] sm:$0xff]  ;;  %v295_v4 = vld [vmem:[#allocation3 + $0x2d0] sm:$0xff]  ;;  %v230_v5 = vld [vmem:[#allocation3 + $0xc8] sm:$0xff] }
  0x94   :  { %3441 = vmatprep.mubr.msk.f32.mxu1 %vm130_vm1, %v273_v24  ;;  %v231_v6 = vld [vmem:[#allocation3 + $0xd0] sm:$0xff]  ;;  %v296_v7 = vld [vmem:[#allocation3 + $0x2d8] sm:$0xff]  ;;  %v297_v8 = vld [vmem:[#allocation3 + $0x2e0] sm:$0xff] }
  0x95   :  { %3343 = vmatmul.mubr.msk.f32.gmra.mrb[4].mxu0 %vm130_vm1, %v208_v25  ;;  %v232_v9 = vld [vmem:[#allocation3 + $0xd8] sm:$0xff]  ;;  %v233_v10 = vld [vmem:[#allocation3 + $0xe0] sm:$0xff]  ;;  %v298_v11 = vld [vmem:[#allocation3 + $0x2e8] sm:$0xff] }
  0x96   :  { %3345 = vmatprep.mubr.msk.f32.mxu0 %vm130_vm1, %v209_v26  ;;  %v299_v12 = vld [vmem:[#allocation3 + $0x2f0] sm:$0xff]  ;;  %v234_v13 = vld [vmem:[#allocation3 + $0xe8] sm:$0xff]  ;;  %v300_v15 = vld [vmem:[#allocation3 + $0x2f8] sm:$0xff] }
  0x97   :  { %3442 = vmatmul.mubr.msk.f32.gmra.mrb[6].mxu1 %vm130_vm1, %v274_v27  ;;  %v235_v14 = vld [vmem:[#allocation3 + $0xf0] sm:$0xff]  ;;  %v301_v16 = vld [vmem:[#allocation3 + $0x300] sm:$0xff]  ;;  %v236_v17 = vld [vmem:[#allocation3 + $0xf8] sm:$0xff] }
  0x98   :  { %3444 = vmatprep.mubr.msk.f32.mxu1 %vm130_vm1, %v275_v28  ;;  %v237_v18 = vld [vmem:[#allocation3 + $0x100] sm:$0xff]  ;;  %v302_v19 = vld [vmem:[#allocation3 + $0x308] sm:$0xff]  ;;  %v303_v20 = vld [vmem:[#allocation3 + $0x310] sm:$0xff] }
  0x99   :  { %3346 = vmatmul.mubr.msk.f32.gmra.mrb[6].mxu0 %vm130_vm1, %v210_v29  ;;  %v238_v21 = vld [vmem:[#allocation3 + $0x108] sm:$0xff]  ;;  %v239_v22 = vld [vmem:[#allocation3 + $0x110] sm:$0xff]  ;;  %v304_v23 = vld [vmem:[#allocation3 + $0x318] sm:$0xff] }
  0x9a   :  { %3348 = vmatprep.mubr.msk.f32.mxu0 %vm130_vm1, %v211_v30  ;;  %v305_v24 = vld [vmem:[#allocation3 + $0x320] sm:$0xff]  ;;  %v240_v25 = vld [vmem:[#allocation3 + $0x118] sm:$0xff]  ;;  %v306_v27 = vld [vmem:[#allocation3 + $0x328] sm:$0xff] }
  0x9b   :  { %3445 = vmatmul.mubr.msk.f32.gmra.mrb[8].mxu1 %vm130_vm1, %v276_v31  ;;  %v241_v26 = vld [vmem:[#allocation3 + $0x120] sm:$0xff]  ;;  %v307_v28 = vld [vmem:[#allocation3 + $0x330] sm:$0xff]  ;;  %v242_v29 = vld [vmem:[#allocation3 + $0x128] sm:$0xff] }
  0x9c   :  { %3447 = vmatprep.mubr.msk.f32.mxu1 %vm130_vm1, %v277_v32  ;;  %v243_v30 = vld [vmem:[#allocation3 + $0x130] sm:$0xff]  ;;  %v308_v31 = vld [vmem:[#allocation3 + $0x338] sm:$0xff]  ;;  %v309_v32 = vld [vmem:[#allocation3 + $0x340] sm:$0xff] }
  0x9d   :  { %3349 = vmatmul.mubr.msk.f32.gmra.mrb[8].mxu0 %vm130_vm1, %v212_v33  ;;  %v244_v33 = vld [vmem:[#allocation3 + $0x138] sm:$0xff] }
  0x9e   :  { %3351 = vmatprep.mubr.msk.f32.mxu0 %vm130_vm1, %v213_v34  ;;  %v245_v34 = vld [vmem:[#allocation3 + $0x140] sm:$0xff] }
  0x9f   :  { %3448 = vmatmul.mubr.msk.f32.gmra.mrb[10].mxu1 %vm130_vm1, %v278_v35  ;;  %v310_v35 = vld [vmem:[#allocation3 + $0x348] sm:$0xff] }
  0xa0   :  { %3450 = vmatprep.mubr.msk.f32.mxu1 %vm130_vm1, %v279_v36  ;;  %v311_v36 = vld [vmem:[#allocation3 + $0x350] sm:$0xff] }
  0xa1   :  { %3352 = vmatmul.mubr.msk.f32.gmra.mrb[10].mxu0 %vm130_vm1, %v214_v37  ;;  %v246_v37 = vld [vmem:[#allocation3 + $0x148] sm:$0xff] }
  0xa2   :  { %3354 = vmatprep.mubr.msk.f32.mxu0 %vm130_vm1, %v215_v38  ;;  %v247_v38 = vld [vmem:[#allocation3 + $0x150] sm:$0xff] }
  0xa3   :  { %3451 = vmatmul.mubr.msk.f32.gmra.mrb[12].mxu1 %vm130_vm1, %v280_v39  ;;  %v312_v39 = vld [vmem:[#allocation3 + $0x358] sm:$0xff] }
  0xa4   :  { %3453 = vmatprep.mubr.msk.f32.mxu1 %vm130_vm1, %v281_v40  ;;  %v313_v40 = vld [vmem:[#allocation3 + $0x360] sm:$0xff] }
  0xa5   :  { %3355 = vmatmul.mubr.msk.f32.gmra.mrb[12].mxu0 %vm130_vm1, %v216_v41  ;;  %v248_v41 = vld [vmem:[#allocation3 + $0x158] sm:$0xff] }
  0xa6   :  { %3357 = vmatprep.mubr.msk.f32.mxu0 %vm130_vm1, %v217_v42  ;;  %v249_v42 = vld [vmem:[#allocation3 + $0x160] sm:$0xff] }
  0xa7   :  { %3454 = vmatmul.mubr.msk.f32.gmra.mrb[14].mxu1 %vm130_vm1, %v282_v43  ;;  %v314_v43 = vld [vmem:[#allocation3 + $0x368] sm:$0xff] }
  0xa8   :  { %3456 = vmatprep.mubr.msk.f32.mxu1 %vm130_vm1, %v283_v44  ;;  %v315_v44 = vld [vmem:[#allocation3 + $0x370] sm:$0xff] }
  0xa9   :  { %3358 = vmatmul.mubr.msk.f32.gmra.mrb[14].mxu0 %vm130_vm1, %v218_v45  ;;  %v250_v45 = vld [vmem:[#allocation3 + $0x168] sm:$0xff] }
  0xaa   :  { %3360 = vmatprep.mubr.msk.f32.mxu0 %vm130_vm1, %v219_v46  ;;  %v251_v46 = vld [vmem:[#allocation3 + $0x170] sm:$0xff] }
  0xab   :  { %3457 = vmatmul.mubr.msk.f32.gmra.mrb[16].mxu1 %vm130_vm1, %v284_v47  ;;  %v316_v47 = vld [vmem:[#allocation3 + $0x378] sm:$0xff] }
  0xac   :  { %3459 = vmatprep.mubr.msk.f32.mxu1 %vm130_vm1, %v285_v48  ;;  %v317_v48 = vld [vmem:[#allocation3 + $0x380] sm:$0xff] }
  0xad   :  { %3361 = vmatmul.mubr.msk.f32.gmra.mrb[16].mxu0 %vm130_vm1, %v220_v49  ;;  %v252_v49 = vld [vmem:[#allocation3 + $0x178] sm:$0xff] }
  0xae   :  { %3363 = vmatprep.mubr.msk.f32.mxu0 %vm130_vm1, %v221_v50  ;;  %v253_v50 = vld [vmem:[#allocation3 + $0x180] sm:$0xff] }
  0xaf   :  { %3460 = vmatmul.mubr.msk.f32.gmra.mrb[18].mxu1 %vm130_vm1, %v286_v51  ;;  %v318_v51 = vld [vmem:[#allocation3 + $0x388] sm:$0xff] }
  0xb0   :  { %3462 = vmatprep.mubr.msk.f32.mxu1 %vm130_vm1, %v287_v52  ;;  %v319_v52 = vld [vmem:[#allocation3 + $0x390] sm:$0xff] }
  0xb1   :  { %3364 = vmatmul.mubr.msk.f32.gmra.mrb[18].mxu0 %vm130_vm1, %v222_v53  ;;  %v254_v53 = vld [vmem:[#allocation3 + $0x188] sm:$0xff] }
  0xb2   :  { %3366 = vmatprep.mubr.msk.f32.mxu0 %vm130_vm1, %v223_v54  ;;  %v255_v54 = vld [vmem:[#allocation3 + $0x190] sm:$0xff] }
  0xb3   :  { %3463 = vmatmul.mubr.msk.f32.gmra.mrb[20].mxu1 %vm130_vm1, %v288_v55  ;;  %v320_v55 = vld [vmem:[#allocation3 + $0x398] sm:$0xff] }
  0xb4   :  { %3465 = vmatprep.mubr.msk.f32.mxu1 %vm130_vm1, %v289_v56  ;;  %v321_v56 = vld [vmem:[#allocation3 + $0x3a0] sm:$0xff] }
  0xb5   :  { %3367 = vmatmul.mubr.msk.f32.gmra.mrb[20].mxu0 %vm130_vm1, %v224_v57  ;;  %v256_v57 = vld [vmem:[#allocation3 + $0x198] sm:$0xff] }
  0xb6   :  { %3369 = vmatprep.mubr.msk.f32.mxu0 %vm130_vm1, %v225_v58  ;;  %v257_v58 = vld [vmem:[#allocation3 + $0x1a0] sm:$0xff] }
  0xb7   :  { %3466 = vmatmul.mubr.msk.f32.gmra.mrb[22].mxu1 %vm130_vm1, %v290_v59  ;;  %v322_v59 = vld [vmem:[#allocation3 + $0x3a8] sm:$0xff] }
  0xb8   :  { %3468 = vmatprep.mubr.msk.f32.mxu1 %vm130_vm1, %v291_v60  ;;  %v323_v60 = vld [vmem:[#allocation3 + $0x3b0] sm:$0xff] }
  0xb9   :  { %3370 = vmatmul.mubr.msk.f32.gmra.mrb[22].mxu0 %vm130_vm1, %v226_v61  ;;  %v258_v61 = vld [vmem:[#allocation3 + $0x1a8] sm:$0xff] }
  0xba   :  { %3372 = vmatprep.mubr.msk.f32.mxu0 %vm130_vm1, %v227_v62  ;;  %v259_v62 = vld [vmem:[#allocation3 + $0x1b0] sm:$0xff] }
  0xbb   :  { %3469 = vmatmul.mubr.msk.f32.gmra.mrb[24].mxu1 %vm130_vm1, %v292_v63  ;;  %v324_v63 = vld [vmem:[#allocation3 + $0x3b8] sm:$0xff] }
  0xbc   :  { %3471 = vmatprep.mubr.msk.f32.mxu1 %vm130_vm1, %v293_v0  ;;  %v325_v0 = vld [vmem:[#allocation3 + $0x3c0] sm:$0xff] }
  0xbd   :  { %3373 = vmatmul.mubr.msk.f32.gmra.mrb[24].mxu0 %vm130_vm1, %v228_v1  ;;  %v260_v1 = vld [vmem:[#allocation3 + $0x1b8] sm:$0xff] }
  0xbe   :  { %3375 = vmatprep.mubr.msk.f32.mxu0 %vm130_vm1, %v229_v2  ;;  %v261_v2 = vld [vmem:[#allocation3 + $0x1c0] sm:$0xff] }
  0xbf   :  { %3472 = vmatmul.mubr.msk.f32.gmra.mrb[26].mxu1 %vm130_vm1, %v294_v3  ;;  %v326_v3 = vld [vmem:[#allocation3 + $0x3c8] sm:$0xff] }
  0xc0   :  { %3474 = vmatprep.mubr.msk.f32.mxu1 %vm130_vm1, %v295_v4  ;;  %v327_v4 = vld [vmem:[#allocation3 + $0x3d0] sm:$0xff] }
  0xc1   :  { %3376 = vmatmul.mubr.msk.f32.gmra.mrb[26].mxu0 %vm130_vm1, %v230_v5  ;;  %v262_v5 = vld [vmem:[#allocation3 + $0x1c8] sm:$0xff] }
  0xc2   :  { %3378 = vmatprep.mubr.msk.f32.mxu0 %vm130_vm1, %v231_v6  ;;  %v263_v6 = vld [vmem:[#allocation3 + $0x1d0] sm:$0xff] }
  0xc3   :  { %3475 = vmatmul.mubr.msk.f32.gmra.mrb[28].mxu1 %vm130_vm1, %v296_v7  ;;  %v328_v7 = vld [vmem:[#allocation3 + $0x3d8] sm:$0xff] }
  0xc4   :  { %3477 = vmatprep.mubr.msk.f32.mxu1 %vm130_vm1, %v297_v8  ;;  %v329_v8 = vld [vmem:[#allocation3 + $0x3e0] sm:$0xff] }
  0xc5   :  { %3379 = vmatmul.mubr.msk.f32.gmra.mrb[28].mxu0 %vm130_vm1, %v232_v9  ;;  %v264_v9 = vld [vmem:[#allocation3 + $0x1d8] sm:$0xff] }
  0xc6   :  { %3381 = vmatprep.mubr.msk.f32.mxu0 %vm130_vm1, %v233_v10  ;;  %v265_v10 = vld [vmem:[#allocation3 + $0x1e0] sm:$0xff] }
  0xc7   :  { %3478 = vmatmul.mubr.msk.f32.gmra.mrb[30].mxu1 %vm130_vm1, %v298_v11  ;;  %v330_v11 = vld [vmem:[#allocation3 + $0x3e8] sm:$0xff] }
  0xc8   :  { %3480 = vmatprep.mubr.msk.f32.mxu1 %vm130_vm1, %v299_v12  ;;  %v331_v12 = vld [vmem:[#allocation3 + $0x3f0] sm:$0xff] }
  0xc9   :  { %3382 = vmatmul.mubr.msk.f32.gmra.mrb[30].mxu0 %vm130_vm1, %v234_v13  ;;  %v266_v13 = vld [vmem:[#allocation3 + $0x1e8] sm:$0xff] }
  0xca   :  { %3384 = vmatprep.mubr.msk.f32.mxu0 %vm130_vm1, %v235_v14  ;;  %v332_v14 = vld [vmem:[#allocation3 + $0x3f8] sm:$0xff] }
  0xcb   :  { %3481 = vmatmul.mubr.msk.f32.gmra.mrb[32].mxu1 %vm130_vm1, %v300_v15  ;;  %v3052_v15 = vld [vmem:[#allocation11] ss:$0 sm:$0xff] }
  0xcc   :  { %3483 = vmatprep.mubr.msk.f32.mxu1 %vm130_vm1, %v301_v16 }
  0xcd   :  { %3385 = vmatmul.mubr.msk.f32.gmra.mrb[32].mxu0 %vm130_vm1, %v236_v17 }
  0xce   :  { %3387 = vmatprep.mubr.msk.f32.mxu0 %vm130_vm1, %v237_v18 }
  0xcf   :  { %3484 = vmatmul.mubr.msk.f32.gmra.mrb[34].mxu1 %vm130_vm1, %v302_v19 }
  0xd0   :  { %3486 = vmatprep.mubr.msk.f32.mxu1 %vm130_vm1, %v303_v20 }
  0xd1   :  { %3388 = vmatmul.mubr.msk.f32.gmra.mrb[34].mxu0 %vm130_vm1, %v238_v21 }
  0xd2   :  { %3390 = vmatprep.mubr.msk.f32.mxu0 %vm130_vm1, %v239_v22 }
  0xd3   :  { %3487 = vmatmul.mubr.msk.f32.gmra.mrb[36].mxu1 %vm130_vm1, %v304_v23 }
  0xd4   :  { %3489 = vmatprep.mubr.msk.f32.mxu1 %vm130_vm1, %v305_v24 }
  0xd5   :  { %3391 = vmatmul.mubr.msk.f32.gmra.mrb[36].mxu0 %vm130_vm1, %v240_v25 }
  0xd6   :  { %3393 = vmatprep.mubr.msk.f32.mxu0 %vm130_vm1, %v241_v26 }
  0xd7   :  { %3490 = vmatmul.mubr.msk.f32.gmra.mrb[38].mxu1 %vm130_vm1, %v306_v27 }
  0xd8   :  { %3492 = vmatprep.mubr.msk.f32.mxu1 %vm130_vm1, %v307_v28 }
  0xd9   :  { %3394 = vmatmul.mubr.msk.f32.gmra.mrb[38].mxu0 %vm130_vm1, %v242_v29 }
  0xda   :  { %3396 = vmatprep.mubr.msk.f32.mxu0 %vm130_vm1, %v243_v30 }
  0xdb   :  { %3493 = vmatmul.mubr.msk.f32.gmra.mrb[40].mxu1 %vm130_vm1, %v308_v31 }
  0xdc   :  { %3495 = vmatprep.mubr.msk.f32.mxu1 %vm130_vm1, %v309_v32 }
  0xdd   :  { %3397 = vmatmul.mubr.msk.f32.gmra.mrb[40].mxu0 %vm130_vm1, %v244_v33 }
  0xde   :  { %3399 = vmatprep.mubr.msk.f32.mxu0 %vm130_vm1, %v245_v34 }
  0xdf   :  { %3496 = vmatmul.mubr.msk.f32.gmra.mrb[42].mxu1 %vm130_vm1, %v310_v35 }
  0xe0   :  { %3498 = vmatprep.mubr.msk.f32.mxu1 %vm130_vm1, %v311_v36 }
  0xe1   :  { %3400 = vmatmul.mubr.msk.f32.gmra.mrb[42].mxu0 %vm130_vm1, %v246_v37 }
  0xe2   :  { %3402 = vmatprep.mubr.msk.f32.mxu0 %vm130_vm1, %v247_v38 }
  0xe3   :  { %3499 = vmatmul.mubr.msk.f32.gmra.mrb[44].mxu1 %vm130_vm1, %v312_v39 }
  0xe4   :  { %3501 = vmatprep.mubr.msk.f32.mxu1 %vm130_vm1, %v313_v40 }
  0xe5   :  { %3403 = vmatmul.mubr.msk.f32.gmra.mrb[44].mxu0 %vm130_vm1, %v248_v41 }
  0xe6   :  { %3405 = vmatprep.mubr.msk.f32.mxu0 %vm130_vm1, %v249_v42 }
  0xe7   :  { %3502 = vmatmul.mubr.msk.f32.gmra.mrb[46].mxu1 %vm130_vm1, %v314_v43 }
  0xe8   :  { %3504 = vmatprep.mubr.msk.f32.mxu1 %vm130_vm1, %v315_v44 }
  0xe9   :  { %3406 = vmatmul.mubr.msk.f32.gmra.mrb[46].mxu0 %vm130_vm1, %v250_v45 }
  0xea   :  { %3408 = vmatprep.mubr.msk.f32.mxu0 %vm130_vm1, %v251_v46 }
  0xeb   :  { %3505 = vmatmul.mubr.msk.f32.gmra.mrb[48].mxu1 %vm130_vm1, %v316_v47 }
  0xec   :  { %3507 = vmatprep.mubr.msk.f32.mxu1 %vm130_vm1, %v317_v48 }
  0xed   :  { %3409 = vmatmul.mubr.msk.f32.gmra.mrb[48].mxu0 %vm130_vm1, %v252_v49  ;;  %v4305_v49 = vld [vmem:[#allocation12] ss:$0 sm:$0xff] }
  0xee   :  { %3411 = vmatprep.mubr.msk.f32.mxu0 %vm130_vm1, %v253_v50 }
  0xef   :  { %3508 = vmatmul.mubr.msk.f32.gmra.mrb[50].mxu1 %vm130_vm1, %v318_v51 }
  0xf0   :  { %3510 = vmatprep.mubr.msk.f32.mxu1 %vm130_vm1, %v319_v52 }
  0xf1   :  { %3412 = vmatmul.mubr.msk.f32.gmra.mrb[50].mxu0 %vm130_vm1, %v254_v53 }
  0xf2   :  { %3414 = vmatprep.mubr.msk.f32.mxu0 %vm130_vm1, %v255_v54 }
  0xf3   :  { %3511 = vmatmul.mubr.msk.f32.gmra.mrb[52].mxu1 %vm130_vm1, %v320_v55 }
  0xf4   :  { %3513 = vmatprep.mubr.msk.f32.mxu1 %vm130_vm1, %v321_v56 }
  0xf5   :  { %3415 = vmatmul.mubr.msk.f32.gmra.mrb[52].mxu0 %vm130_vm1, %v256_v57 }
  0xf6   :  { %3417 = vmatprep.mubr.msk.f32.mxu0 %vm130_vm1, %v257_v58 }
  0xf7   :  { %3514 = vmatmul.mubr.msk.f32.gmra.mrb[54].mxu1 %vm130_vm1, %v322_v59 }
  0xf8   :  { %3516 = vmatprep.mubr.msk.f32.mxu1 %vm130_vm1, %v323_v60 }
  0xf9   :  { %3418 = vmatmul.mubr.msk.f32.gmra.mrb[54].mxu0 %vm130_vm1, %v258_v61 }
  0xfa   :  { %3420 = vmatprep.mubr.msk.f32.mxu0 %vm130_vm1, %v259_v62 }
  0xfb   :  { %3517 = vmatmul.mubr.msk.f32.gmra.mrb[56].mxu1 %vm130_vm1, %v324_v63 }
  0xfc   :  { %3519 = vmatprep.mubr.msk.f32.mxu1 %vm130_vm1, %v325_v0 }
  0xfd   :  { %3421 = vmatmul.mubr.msk.f32.gmra.mrb[56].mxu0 %vm130_vm1, %v260_v1 }
  0xfe   :  { %3423 = vmatprep.mubr.msk.f32.mxu0 %vm130_vm1, %v261_v2 }
  0xff   :  { %3520 = vmatmul.mubr.msk.f32.gmra.mrb[58].mxu1 %vm130_vm1, %v326_v3 }
 0x100   :  { %3522 = vmatprep.mubr.msk.f32.mxu1 %vm130_vm1, %v327_v4 }
 0x101   :  { %3424 = vmatmul.mubr.msk.f32.gmra.mrb[58].mxu0 %vm130_vm1, %v262_v5 }
 0x102   :  { %3426 = vmatprep.mubr.msk.f32.mxu0 %vm130_vm1, %v263_v6 }
 0x103   :  { %3523 = vmatmul.mubr.msk.f32.gmra.mrb[60].mxu1 %vm130_vm1, %v328_v7 }
 0x104   :  { %3525 = vmatprep.mubr.msk.f32.mxu1 %vm130_vm1, %v329_v8 }
 0x105   :  { %3427 = vmatmul.mubr.msk.f32.gmra.mrb[60].mxu0 %vm130_vm1, %v264_v9 }
 0x106   :  { %3429 = vmatprep.mubr.msk.f32.mxu0 %vm130_vm1, %v265_v10 }
 0x107   :  { %3526 = vmatmul.mubr.msk.f32.gmra.mrb[62].mxu1 %vm130_vm1, %v330_v11 }
 0x108   :  { %3528 = vmatprep.mubr.msk.f32.mxu1 %vm130_vm1, %v331_v12 }
 0x109   :  { %3430 = vmatmul.mubr.msk.f32.gmra.mrb[62].mxu0 %vm130_vm1, %v266_v13 }
 0x10b   :  { %3529 = vmatmul.mubr.msk.f32.gmra.mrb[64].mxu1 %vm130_vm1, %v332_v14 }
 0x15c   :  { %v200_v16 = vpop.f32.mrb[0].mxu0 }
 0x15d   :  { %v201_v17 = vadd.f32 %v3052_v15, %v200_v16  ;;  %v3330_v18 = vpop.f32.mrb[1].mxu0 }
 0x15e   :  { %v3434_v19 = vpop.f32.mrb[0].mxu1 }
 0x15f   :  { %204 = vst.msk [vmem:[#allocation2] sm:$0xff] %vm130_vm1, %v201_v17  ;;  %v1098_v20 = vpop.f32.mrb[1].mxu1 }
 0x162   :  { %v3437_v21 = vpop.f32.mrb[2].mxu1 }
 0x163   :  { %v1108_v22 = vpop.f32.mrb[3].mxu1 }
 0x164   :  { %v3341_v23 = vpop.f32.mrb[2].mxu0 }
 0x165   :  { %v788_v24 = vpop.f32.mrb[3].mxu0 }
 0x166   :  { %v4286_v25 = vld [vmem:[#allocation2] sm:$0xff]  ;;  %v3440_v26 = vpop.f32.mrb[4].mxu1 }
 0x167   :  { %v1493_v27 = vadd.f32 %v3437_v21, %v4286_v25  ;;  %v1118_v28 = vpop.f32.mrb[5].mxu1  ;;  %v1491_v29 = vadd.f32 %v3434_v19, %v4286_v25  ;;  %v1429_v31 = vadd.f32 %v3341_v23, %v4286_v25  ;;  %v1428_v33 = vadd.f32 %v4286_v25, %v788_v24 }
 0x168   :  { %v3344_v30 = vpop.f32.mrb[4].mxu0  ;;  %v1495_v35 = vadd.f32 %v3440_v26, %v4286_v25  ;;  %v1492_v39 = vadd.f32 %v4286_v25, %v1108_v22  ;;  %v1494_v45 = vadd.f32 %v4286_v25, %v1118_v28  ;;  %v1490_v54 = vadd.f32 %v4286_v25, %v1098_v20 }
 0x169   :  { %v798_v32 = vpop.f32.mrb[5].mxu0  ;;  %3562 = vtanh.f32 %v1493_v27  ;;  %v1431_v41 = vadd.f32 %v3344_v30, %v4286_v25 }
 0x16a   :  { %v3443_v34 = vpop.f32.mrb[6].mxu1  ;;  %3564 = vtanh.f32 %v1491_v29  ;;  %v1430_v47 = vadd.f32 %v4286_v25, %v798_v32 }
 0x16b   :  { %v1128_v36 = vpop.f32.mrb[7].mxu1  ;;  %3566 = vtanh.f32 %v1429_v31  ;;  %v1497_v2 = vadd.f32 %v3443_v34, %v4286_v25 }
 0x16c   :  { %v3347_v37 = vpop.f32.mrb[6].mxu0  ;;  %3568 = vtanh.f32 %v1428_v33  ;;  %v1496_v58 = vadd.f32 %v4286_v25, %v1128_v36 }
 0x16d   :  { %v4293_v38 = vpop.f32.mrb[7].mxu0  ;;  %3570 = vtanh.f32 %v1495_v35  ;;  %v1433_v15 = vadd.f32 %v3347_v37, %v4286_v25 }
 0x16e   :  { %v3446_v40 = vpop.f32.mrb[8].mxu1  ;;  %3572 = vtanh.f32 %v1492_v39  ;;  %v1432_v28 = vadd.f32 %v4286_v25, %v4293_v38 }
 0x16f   :  { %v4297_v42 = vpop.f32.mrb[9].mxu1  ;;  %3574 = vtanh.f32 %v1431_v41  ;;  %v1499_v5 = vadd.f32 %v3446_v40, %v4286_v25 }
 0x170   :  { %v3350_v43 = vpop.f32.mrb[8].mxu0  ;;  %3576 = vtanh.f32 %v1494_v45  ;;  %v1498_v40 = vadd.f32 %v4286_v25, %v4297_v42 }
 0x171   :  { %v4299_v44 = vpop.f32.mrb[9].mxu0  ;;  %3578 = vtanh.f32 %v1430_v47  ;;  %v1435_v17 = vadd.f32 %v3350_v43, %v4286_v25 }
 0x172   :  { %v3449_v46 = vpop.f32.mrb[10].mxu1  ;;  %3580 = vtanh.f32 %v1490_v54 }
 0x173   :  { %v4303_v48 = vpop.f32.mrb[11].mxu1  ;;  %v3563_v51 = vpop.eup %3562  ;;  %3582 = vtanh.f32 %v1496_v58  ;;  %v1501_v30 = vadd.f32 %v3449_v46, %v4286_v25 }
 0x174   :  { %v4307_v50 = vpop.f32.mrb[10].mxu0  ;;  %v3565_v53 = vpop.eup %3564  ;;  %v1756_v56 = vmul.f32 %v3563_v51, %v4305_v49  ;;  %3584 = vtanh.f32 %v1497_v2 }
 0x175   :  { %v4309_v52 = vpop.f32.mrb[11].mxu0  ;;  %v3567_v57 = vpop.eup %3566  ;;  %v1754_v12 = vmul.f32 %v3565_v53, %v4305_v49  ;;  %3586 = vtanh.f32 %v1499_v5  ;;  %v1437_v43 = vadd.f32 %v4307_v50, %v4286_v25  ;;  %v1434_v50 = vadd.f32 %v4286_v25, %v4299_v44 }
 0x176   :  { %v4312_v55 = vpop.f32.mrb[12].mxu1  ;;  %v3569_v60 = vpop.eup %3568  ;;  %v2014_v61 = vsel %vm130_vm1, %v1756_v56, 0.0  ;;  %v1692_v8 = vmul.f32 %v3567_v57, %v4305_v49  ;;  %3588 = vtanh.f32 %v1433_v15 }
 0x177   :  { %v4316_v59 = vpop.f32.mrb[13].mxu1  ;;  %v3571_v63 = vpop.eup %3570  ;;  %2015 = vadd.xlane.f32.xlu1 %v2014_v61  ;;  %v1691_v0 = vmul.f32 %v3569_v60, %v4305_v49  ;;  %v2008_v22 = vsel %vm130_vm1, %v1754_v12, 0.0  ;;  %3590 = vtanh.f32 %v1435_v17  ;;  %v1503_v60 = vadd.f32 %v4312_v55, %v4286_v25 }
 0x178   :  { %v4319_v62 = vpop.f32.mrb[12].mxu0  ;;  %v1758_v4 = vmul.f32 %v3571_v63, %v4305_v49  ;;  %v3573_v9 = vpop.eup %3572  ;;  %v1822_v18 = vsel %vm130_vm1, %v1692_v8, 0.0  ;;  %3592 = vtanh.f32 %v1432_v28  ;;  %v1500_v55 = vadd.f32 %v4286_v25, %v4303_v48 }
 0x179   :  { %v4322_v1 = vpop.f32.mrb[13].mxu0  ;;  %v1819_v6 = vsel %vm130_vm1, %v1691_v0, 0.0  ;;  %v3575_v13 = vpop.eup %3574  ;;  %v1755_v20 = vmul.f32 %v3573_v9, %v4305_v49  ;;  %3594 = vtanh.f32 %v1501_v30 }
 0x17a   :  { %v4325_v3 = vpop.f32.mrb[14].mxu1  ;;  %1820 = vadd.xlane.f32.xlu0 %v1819_v6  ;;  %v2020_v10 = vsel %vm130_vm1, %v1758_v4, 0.0  ;;  %v3577_v21 = vpop.eup %3576  ;;  %v1694_v24 = vmul.f32 %v3575_v13, %v4305_v49  ;;  %3596 = vtanh.f32 %v1498_v40 }
 0x17b   :  { %v4330_v7 = vpop.f32.mrb[15].mxu1  ;;  %2021 = vadd.xlane.f32.xlu1 %v2020_v10  ;;  %v3579_v26 = vpop.eup %3578  ;;  %v2011_v31 = vsel %vm130_vm1, %v1755_v20, 0.0  ;;  %v1757_v33 = vmul.f32 %v3577_v21, %v4305_v49  ;;  %3598 = vtanh.f32 %v1437_v43  ;;  %v1439_v10 = vadd.f32 %v4319_v62, %v4286_v25 }
 0x17c   :  { %v4334_v11 = vpop.f32.mrb[14].mxu0  ;;  %v3581_v34 = vpop.eup %3580  ;;  %v1828_v35 = vsel %vm130_vm1, %v1694_v24, 0.0  ;;  %v1693_v37 = vmul.f32 %v3579_v26, %v4305_v49  ;;  %3600 = vtanh.f32 %v1434_v50  ;;  %v1436_v62 = vadd.f32 %v4286_v25, %v4309_v52 }
 0x17d   :  { %v4337_v14 = vpop.f32.mrb[15].mxu0  ;;  %v3583_v38 = vpop.eup %3582  ;;  %v2017_v45 = vsel %vm130_vm1, %v1757_v33, 0.0  ;;  %v1753_v47 = vmul.f32 %v3581_v34, %v4305_v49  ;;  %3602 = vtanh.f32 %v1503_v60  ;;  %v1438_v26 = vadd.f32 %v4286_v25, %v4322_v1 }
 0x17e   :  { %v4340_v16 = vpop.f32.mrb[16].mxu1  ;;  %1823 = vadd.xlane.f32.xlu0 %v1822_v18  ;;  %v3585_v51 = vpop.eup %3584  ;;  %v1825_v53 = vsel %vm130_vm1, %v1693_v37, 0.0  ;;  %v1759_v42 = vmul.f32 %v3583_v38, %v4305_v49  ;;  %3604 = vtanh.f32 %v1500_v55  ;;  %v1502_v1 = vadd.f32 %v4286_v25, %v4316_v59 }
 0x17f   :  { %v4344_v19 = vpop.f32.mrb[17].mxu1  ;;  %2009 = vadd.xlane.f32.xlu1 %v2008_v22  ;;  %v3587_v56 = vpop.eup %3586  ;;  %v2005_v61 = vsel %vm130_vm1, %v1753_v47, 0.0  ;;  %v1760_v0 = vmul.f32 %v3585_v51, %v4305_v49  ;;  %3606 = vtanh.f32 %v1439_v10  ;;  %v1504_v43 = vadd.f32 %v4286_v25, %v4330_v7 }
 0x180   :  { %v4348_v23 = vpop.f32.mrb[16].mxu0  ;;  %v3589_v2 = vpop.eup %3588  ;;  %v2023_v4 = vsel %vm130_vm1, %v1759_v42, 0.0  ;;  %v1762_v44 = vmul.f32 %v3587_v56, %v4305_v49  ;;  %3608 = vtanh.f32 %v1436_v62  ;;  %v1505_v7 = vadd.f32 %v4325_v3, %v4286_v25 }
 0x181   :  { %v4351_v27 = vpop.f32.mrb[17].mxu0  ;;  %v3591_v6 = vpop.eup %3590  ;;  %v2026_v12 = vsel %vm130_vm1, %v1760_v0, 0.0  ;;  %v1696_v15 = vmul.f32 %v3589_v2, %v4305_v49  ;;  %3610 = vtanh.f32 %v1438_v26  ;;  %v1440_v0 = vadd.f32 %v4286_v25, %v4337_v14 }
 0x182   :  { %v4355_v29 = vpop.f32.mrb[18].mxu1  ;;  %2012 = vadd.xlane.f32.xlu0 %v2011_v31  ;;  %v3593_v17 = vpop.eup %3592  ;;  %v2032_v18 = vsel %vm130_vm1, %v1762_v44, 0.0  ;;  %v1698_v48 = vmul.f32 %v3591_v6, %v4305_v49  ;;  %3612 = vtanh.f32 %v1502_v1  ;;  %v1441_v14 = vadd.f32 %v4334_v11, %v4286_v25 }
 0x183   :  { %v4359_v32 = vpop.f32.mrb[19].mxu1  ;;  %1829 = vadd.xlane.f32.xlu1 %v1828_v35  ;;  %v3595_v21 = vpop.eup %3594  ;;  %v1834_v28 = vsel %vm130_vm1, %v1696_v15, 0.0  ;;  %v1695_v31 = vmul.f32 %v3593_v17, %v4305_v49  ;;  %3614 = vtanh.f32 %v1504_v43 }
 0x184   :  { %v4363_v36 = vpop.f32.mrb[18].mxu0  ;;  %v3597_v33 = vpop.eup %3596  ;;  %v1840_v34 = vsel %vm130_vm1, %v1698_v48, 0.0  ;;  %v1764_v52 = vmul.f32 %v3595_v21, %v4305_v49  ;;  %3616 = vtanh.f32 %v1505_v7 }
 0x185   :  { %v4366_v39 = vpop.f32.mrb[19].mxu0  ;;  %v3599_v37 = vpop.eup %3598  ;;  %v1761_v51 = vmul.f32 %v3597_v33, %v4305_v49  ;;  %3618 = vtanh.f32 %v1440_v0  ;;  %v1509_v0 = vadd.f32 %v4355_v29, %v4286_v25  ;;  %v1508_v29 = vadd.f32 %v4286_v25, %v4359_v32 }
 0x186   :  { %v4370_v41 = vpop.f32.mrb[20].mxu1  ;;  %2018 = vadd.xlane.f32.xlu0 %v2017_v45  ;;  %v1831_v45 = vsel %vm130_vm1, %v1695_v31, 0.0  ;;  %v2038_v42 = vsel %vm130_vm1, %v1764_v52, 0.0  ;;  %v1700_v59 = vmul.f32 %v3599_v37, %v4305_v49  ;;  %3620 = vtanh.f32 %v1441_v14 }
 0x187   :  { %v4375_v46 = vpop.f32.mrb[21].mxu1  ;;  %1826 = vadd.xlane.f32.xlu1 %v1825_v53  ;;  %v3601_v53 = vpop.eup %3600  ;;  %v2029_v2 = vsel %vm130_vm1, %v1761_v51, 0.0  ;;  %v1443_v37 = vadd.f32 %v4348_v23, %v4286_v25  ;;  %v1442_v23 = vadd.f32 %v4286_v25, %v4351_v27 }
 0x188   :  { %v4379_v54 = vpop.f32.mrb[20].mxu0  ;;  %v3603_v50 = vpop.eup %3602  ;;  %v1697_v44 = vmul.f32 %v3601_v53, %v4305_v49  ;;  %v1846_v55 = vsel %vm130_vm1, %v1700_v59, 0.0 }
 0x189   :  { %v4382_v57 = vpop.f32.mrb[21].mxu0  ;;  %v3605_v6 = vpop.eup %3604  ;;  %v1766_v3 = vmul.f32 %v3603_v50, %v4305_v49 }
 0x18a   :  { %v4386_v58 = vpop.f32.mrb[22].mxu1  ;;  %2006 = vadd.xlane.f32.xlu0 %v2005_v61  ;;  %v1837_v48 = vsel %vm130_vm1, %v1697_v44, 0.0  ;;  %v1763_v62 = vmul.f32 %v3605_v6, %v4305_v49 }
 0x18b   :  { %v4391_v63 = vpop.f32.mrb[23].mxu1  ;;  %2024 = vadd.xlane.f32.xlu1 %v2023_v4 }
 0x18c   :  { %v4395_v5 = vpop.f32.mrb[22].mxu0  ;;  %v2035_v1 = vsel %vm130_vm1, %v1763_v62, 0.0  ;;  %v1445_v62 = vadd.f32 %v4363_v36, %v4286_v25  ;;  %v1444_v36 = vadd.f32 %v4286_v25, %v4366_v39 }
 0x18d   :  { %v4398_v8 = vpop.f32.mrb[23].mxu0 }
 0x18e   :  { %v4402_v9 = vpop.f32.mrb[24].mxu1  ;;  %2027 = vadd.xlane.f32.xlu0 %v2026_v12  ;;  %v3607_v12 = vpop.eup %3606 }
 0x18f   :  { %v4407_v13 = vpop.f32.mrb[25].mxu1  ;;  %2033 = vadd.xlane.f32.xlu1 %v2032_v18  ;;  %v1507_v18 = vadd.f32 %v4340_v16, %v4286_v25  ;;  %v3609_v26 = vpop.eup %3608  ;;  %v1702_v11 = vmul.f32 %v3607_v12, %v4305_v49  ;;  %v1506_v16 = vadd.f32 %v4286_v25, %v4344_v19 }
 0x190   :  { %v4411_v20 = vpop.f32.mrb[24].mxu0  ;;  %v3611_v33 = vpop.eup %3610 }
 0x191   :  { %v4414_v22 = vpop.f32.mrb[25].mxu0  ;;  %3622 = vtanh.f32 %v1507_v18  ;;  %v3613_v51 = vpop.eup %3612  ;;  %v1852_v53 = vsel %vm130_vm1, %v1702_v11, 0.0  ;;  %v1701_v19 = vmul.f32 %v3611_v33, %v4305_v49 }
 0x192   :  { %v4418_v24 = vpop.f32.mrb[26].mxu1  ;;  %1835 = vadd.xlane.f32.xlu0 %v1834_v28  ;;  %v2044_v28 = vsel %vm130_vm1, %v1766_v3, 0.0  ;;  %v3615_v59 = vpop.eup %3614  ;;  %3624 = vtanh.f32 %v1506_v16  ;;  %v1765_v6 = vmul.f32 %v3613_v51, %v4305_v49 }
 0x193   :  { %v4423_v30 = vpop.f32.mrb[27].mxu1  ;;  %1841 = vadd.xlane.f32.xlu1 %v1840_v34  ;;  %3626 = vtanh.f32 %v1443_v37  ;;  %v1849_v3 = vsel %vm130_vm1, %v1701_v19, 0.0  ;;  %v1767_v27 = vmul.f32 %v3615_v59, %v4305_v49 }
 0x194   :  { %v4427_v35 = vpop.f32.mrb[26].mxu0  ;;  %3628 = vtanh.f32 %v1442_v23 }
 0x195   :  { %v4430_v38 = vpop.f32.mrb[27].mxu0  ;;  %3630 = vtanh.f32 %v1509_v0  ;;  %v2047_v16 = vsel %vm130_vm1, %v1767_v27, 0.0 }
 0x196   :  { %v4434_v40 = vpop.f32.mrb[28].mxu1  ;;  %1832 = vadd.xlane.f32.xlu0 %v1831_v45  ;;  %v1699_v45 = vmul.f32 %v3609_v26, %v4305_v49  ;;  %v2041_v26 = vsel %vm130_vm1, %v1765_v6, 0.0  ;;  %3632 = vtanh.f32 %v1508_v29 }
 0x197   :  { %v4439_v47 = vpop.f32.mrb[29].mxu1  ;;  %2039 = vadd.xlane.f32.xlu1 %v2038_v42  ;;  %3634 = vtanh.f32 %v1445_v62 }
 0x198   :  { %v4443_v56 = vpop.f32.mrb[28].mxu0  ;;  %3636 = vtanh.f32 %v1444_v36 }
 0x199   :  { %v4446_v60 = vpop.f32.mrb[29].mxu0 }
 0x19a   :  { %v4450_v61 = vpop.f32.mrb[30].mxu1  ;;  %2030 = vadd.xlane.f32.xlu0 %v2029_v2  ;;  %v1843_v2 = vsel %vm130_vm1, %v1699_v45, 0.0 }
 0x19b   :  { %v4455_v4 = vpop.f32.mrb[31].mxu1  ;;  %1847 = vadd.xlane.f32.xlu1 %v1846_v55  ;;  %v3617_v55 = vpop.eup %3616 }
 0x19c   :  { %v4459_v10 = vpop.f32.mrb[30].mxu0  ;;  %v3619_v14 = vpop.eup %3618  ;;  %v1768_v11 = vmul.f32 %v3617_v55, %v4305_v49 }
 0x19d   :  { %v4462_v15 = vpop.f32.mrb[31].mxu0  ;;  %v3621_v33 = vpop.eup %3620  ;;  %v1703_v32 = vmul.f32 %v3619_v14, %v4305_v49  ;;  %v1447_v14 = vadd.f32 %v4379_v54, %v4286_v25  ;;  %v1446_v54 = vadd.f32 %v4286_v25, %v4382_v57 }
 0x19e   :  { %v4466_v17 = vpop.f32.mrb[32].mxu1  ;;  %1838 = vadd.xlane.f32.xlu0 %v1837_v48  ;;  %v2050_v19 = vsel %vm130_vm1, %v1768_v11, 0.0  ;;  %v1704_v23 = vmul.f32 %v3621_v33, %v4305_v49 }
 0x19f   :  { %v4471_v21 = vpop.f32.mrb[33].mxu1  ;;  %2045 = vadd.xlane.f32.xlu1 %v2044_v28 }
 0x1a0   :  { %v4475_v31 = vpop.f32.mrb[32].mxu0  ;;  %v1858_v29 = vsel %vm130_vm1, %v1704_v23, 0.0 }
 0x1a1   :  { %v4478_v34 = vpop.f32.mrb[33].mxu0 }
 0x1a2   :  { %v4482_v52 = vpop.f32.mrb[34].mxu1  ;;  %2036 = vadd.xlane.f32.xlu0 %v2035_v1  ;;  %v3623_v1 = vpop.eup %3622 }
 0x1a3   :  { %v4487_v43 = vpop.f32.mrb[35].mxu1  ;;  %1853 = vadd.xlane.f32.xlu1 %v1852_v53  ;;  %v1511_v53 = vadd.f32 %v4370_v41, %v4286_v25  ;;  %v3625_v0 = vpop.eup %3624  ;;  %v1770_v39 = vmul.f32 %v3623_v1, %v4305_v49  ;;  %v1510_v41 = vadd.f32 %v4286_v25, %v4375_v46 }
 0x1a4   :  { %v4491_v42 = vpop.f32.mrb[34].mxu0  ;;  %v3627_v55 = vpop.eup %3626 }
 0x1a5   :  { %v4494_v50 = vpop.f32.mrb[35].mxu0  ;;  %3638 = vtanh.f32 %v1511_v53  ;;  %v3629_v11 = vpop.eup %3628  ;;  %v2056_v33 = vsel %vm130_vm1, %v1770_v39, 0.0  ;;  %v1706_v46 = vmul.f32 %v3627_v55, %v4305_v49  ;;  %v1512_v53 = vadd.f32 %v4286_v25, %v4391_v63 }
 0x1a6   :  { %v4498_v7 = vpop.f32.mrb[36].mxu1  ;;  %1844 = vadd.xlane.f32.xlu0 %v1843_v2  ;;  %v1855_v2 = vsel %vm130_vm1, %v1703_v32, 0.0  ;;  %v3631_v32 = vpop.eup %3630  ;;  %3640 = vtanh.f32 %v1510_v41  ;;  %v1513_v63 = vadd.f32 %v4386_v58, %v4286_v25 }
 0x1a7   :  { %v4503_v44 = vpop.f32.mrb[37].mxu1  ;;  %1850 = vadd.xlane.f32.xlu1 %v1849_v3  ;;  %3642 = vtanh.f32 %v1447_v14  ;;  %v1864_v39 = vsel %vm130_vm1, %v1706_v46, 0.0  ;;  %v1772_v57 = vmul.f32 %v3631_v32, %v4305_v49 }
 0x1a8   :  { %v4507_v12 = vpop.f32.mrb[36].mxu0  ;;  %3644 = vtanh.f32 %v1446_v54 }
 0x1a9   :  { %v4510_v18 = vpop.f32.mrb[37].mxu0  ;;  %3646 = vtanh.f32 %v1512_v53 }
 0x1aa   :  { %v4514_v48 = vpop.f32.mrb[38].mxu1  ;;  %2042 = vadd.xlane.f32.xlu0 %v2041_v26  ;;  %v1769_v26 = vmul.f32 %v3625_v0, %v4305_v49  ;;  %v1705_v0 = vmul.f32 %v3629_v11, %v4305_v49  ;;  %3648 = vtanh.f32 %v1513_v63 }
 0x1ab   :  { %v4519_v28 = vpop.f32.mrb[39].mxu1  ;;  %2048 = vadd.xlane.f32.xlu1 %v2047_v16 }
 0x1ac   :  { %v4523_v37 = vpop.f32.mrb[38].mxu0  ;;  %v1861_v11 = vsel %vm130_vm1, %v1705_v0, 0.0 }
 0x1ad   :  { %v4526_v45 = vpop.f32.mrb[39].mxu0 }
 0x1ae   :  { %v4530_v51 = vpop.f32.mrb[40].mxu1  ;;  %2051 = vadd.xlane.f32.xlu0 %v2050_v19  ;;  %v2053_v19 = vsel %vm130_vm1, %v1769_v26, 0.0  ;;  %v1448_v26 = vadd.f32 %v4286_v25, %v4398_v8  ;;  %v1449_v8 = vadd.f32 %v4395_v5, %v4286_v25 }
 0x1af   :  { %v4535_v59 = vpop.f32.mrb[41].mxu1  ;;  %1856 = vadd.xlane.f32.xlu1 %v1855_v2  ;;  %v3633_v2 = vpop.eup %3632 }
 0x1b0   :  { %v4539_v6 = vpop.f32.mrb[40].mxu0  ;;  %v3635_v41 = vpop.eup %3634  ;;  %v1771_v46 = vmul.f32 %v3633_v2, %v4305_v49  ;;  %3650 = vtanh.f32 %v1448_v26  ;;  %v1515_v2 = vadd.f32 %v4402_v9, %v4286_v25  ;;  %v1514_v9 = vadd.f32 %v4286_v25, %v4407_v13 }
 0x1b1   :  { %v4542_v3 = vpop.f32.mrb[41].mxu0  ;;  %v3637_v32 = vpop.eup %3636  ;;  %v1708_v58 = vmul.f32 %v3635_v41, %v4305_v49  ;;  %3652 = vtanh.f32 %v1449_v8 }
 0x1b2   :  { %v4546_v27 = vpop.f32.mrb[42].mxu1  ;;  %1859 = vadd.xlane.f32.xlu0 %v1858_v29  ;;  %v1707_v41 = vmul.f32 %v3637_v32, %v4305_v49  ;;  %3654 = vtanh.f32 %v1515_v2  ;;  %v1451_v32 = vadd.f32 %v4411_v20, %v4286_v25  ;;  %v1450_v20 = vadd.f32 %v4286_v25, %v4414_v22 }
 0x1b3   :  { %v4551_v62 = vpop.f32.mrb[43].mxu1  ;;  %2057 = vadd.xlane.f32.xlu1 %v2056_v33  ;;  %3656 = vtanh.f32 %v1514_v9 }
 0x1b4   :  { %v4555_v16 = vpop.f32.mrb[42].mxu0  ;;  %3658 = vtanh.f32 %v1451_v32 }
 0x1b5   :  { %v4558_v1 = vpop.f32.mrb[43].mxu0  ;;  %3660 = vtanh.f32 %v1450_v20 }
 0x1b6   :  { %v4562_v36 = vpop.f32.mrb[44].mxu1  ;;  %2054 = vadd.xlane.f32.xlu0 %v2053_v19  ;;  %v2062_v19 = vsel %vm130_vm1, %v1772_v57, 0.0  ;;  %v2059_v57 = vsel %vm130_vm1, %v1771_v46, 0.0 }
 0x1b7   :  { %v4567_v23 = vpop.f32.mrb[45].mxu1  ;;  %1865 = vadd.xlane.f32.xlu1 %v1864_v39  ;;  %v3639_v39 = vpop.eup %3638 }
 0x1b8   :  { %v4571_v55 = vpop.f32.mrb[44].mxu0  ;;  %v1774_v5 = vmul.f32 %v3639_v39, %v4305_v49 }
 0x1b9   :  { %v4574_v14 = vpop.f32.mrb[45].mxu0 }
 0x1ba   :  { %v4578_v29 = vpop.f32.mrb[46].mxu1  ;;  %1862 = vadd.xlane.f32.xlu0 %v1861_v11 }
 0x1bb   :  { %v4583_v33 = vpop.f32.mrb[47].mxu1  ;;  %2063 = vadd.xlane.f32.xlu1 %v2062_v19  ;;  %v1870_v19 = vsel %vm130_vm1, %v1708_v58, 0.0  ;;  %v1867_v58 = vsel %vm130_vm1, %v1707_v41, 0.0 }
 0x1bc   :  { %v4587_v54 = vpop.f32.mrb[46].mxu0 }
 0x1bd   :  { %5372 = vst [vmem:[#allocation21_spill] sm:$0xff] %v4587_v54  ;;  %v4590_v53 = vpop.f32.mrb[47].mxu0  ;;  %v3641_v54 = vpop.eup %3640 }
 0x1be   :  { %5373 = vst [vmem:[#allocation22_spill] sm:$0xff] %v4590_v53  ;;  %v4594_v0 = vpop.f32.mrb[48].mxu1  ;;  %2060 = vadd.xlane.f32.xlu0 %v2059_v57  ;;  %v3643_v53 = vpop.eup %3642  ;;  %v1773_v39 = vmul.f32 %v3641_v54, %v4305_v49  ;;  %v1517_v54 = vadd.f32 %v4418_v24, %v4286_v25  ;;  %v1516_v24 = vadd.f32 %v4286_v25, %v4423_v30 }
 0x1bf   :  { %5374 = vst [vmem:[#allocation23_spill] sm:$0xff] %v4594_v0  ;;  %v4599_v11 = vpop.f32.mrb[49].mxu1  ;;  %1871 = vadd.xlane.f32.xlu1 %v1870_v19  ;;  %v3645_v0 = vpop.eup %3644  ;;  %v2068_v19 = vsel %vm130_vm1, %v1774_v5, 0.0  ;;  %v1710_v13 = vmul.f32 %v3643_v53, %v4305_v49 }
 0x1c0   :  { %v4603_v63 = vpop.f32.mrb[48].mxu0  ;;  %v2065_v5 = vsel %vm130_vm1, %v1773_v39, 0.0  ;;  %v1709_v53 = vmul.f32 %v3645_v0, %v4305_v49  ;;  %3662 = vtanh.f32 %v1517_v54  ;;  %v1453_v0 = vadd.f32 %v4427_v35, %v4286_v25 }
 0x1c1   :  { %v4606_v26 = vpop.f32.mrb[49].mxu0  ;;  %3664 = vtanh.f32 %v1516_v24  ;;  %v1452_v35 = vadd.f32 %v4286_v25, %v4430_v38 }
 0x1c2   :  { %5375 = vst [vmem:[#allocation24_spill] sm:$0xff] %v4606_v26  ;;  %v4610_v46 = vpop.f32.mrb[50].mxu1  ;;  %1868 = vadd.xlane.f32.xlu0 %v1867_v58  ;;  %v3647_v26 = vpop.eup %3646  ;;  %3666 = vtanh.f32 %v1453_v0 }
 0x1c3   :  { %v4615_v57 = vpop.f32.mrb[51].mxu1  ;;  %2069 = vadd.xlane.f32.xlu1 %v2068_v19  ;;  %v1876_v19 = vsel %vm130_vm1, %v1710_v13, 0.0  ;;  %v1775_v22 = vmul.f32 %v3647_v26, %v4305_v49  ;;  %v1873_v13 = vsel %vm130_vm1, %v1709_v53, 0.0  ;;  %3668 = vtanh.f32 %v1452_v35 }
 0x1c4   :  { %5376 = vst [vmem:[#allocation25_spill] sm:$0xff] %v4615_v57  ;;  %v4619_v8 = vpop.f32.mrb[50].mxu0  ;;  %v3649_v57 = vpop.eup %3648 }
 0x1c5   :  { %v4622_v2 = vpop.f32.mrb[51].mxu0  ;;  %v1776_v26 = vmul.f32 %v3649_v57, %v4305_v49  ;;  %v1519_v57 = vadd.f32 %v4434_v40, %v4286_v25  ;;  %v1518_v40 = vadd.f32 %v4286_v25, %v4439_v47 }
 0x1c6   :  { %5377 = vst [vmem:[#allocation26_spill] sm:$0xff] %v4622_v2  ;;  %v4626_v41 = vpop.f32.mrb[52].mxu1  ;;  %2066 = vadd.xlane.f32.xlu0 %v2065_v5  ;;  %v3651_v2 = vpop.eup %3650 }
 0x1c7   :  { %v4631_v58 = vpop.f32.mrb[53].mxu1  ;;  %1877 = vadd.xlane.f32.xlu1 %v1876_v19  ;;  %v2071_v19 = vsel %vm130_vm1, %v1775_v22, 0.0  ;;  %v1711_v30 = vmul.f32 %v3651_v2, %v4305_v49  ;;  %v2074_v22 = vsel %vm130_vm1, %v1776_v26, 0.0  ;;  %3670 = vtanh.f32 %v1519_v57 }
 0x1c8   :  { %5378 = vst [vmem:[#allocation27_spill] sm:$0xff] %v4631_v58  ;;  %v4635_v9 = vpop.f32.mrb[52].mxu0  ;;  %v3653_v58 = vpop.eup %3652  ;;  %3672 = vtanh.f32 %v1518_v40 }
 0x1c9   :  { %v4638_v32 = vpop.f32.mrb[53].mxu0  ;;  %v1712_v2 = vmul.f32 %v3653_v58, %v4305_v49  ;;  %v1455_v58 = vadd.f32 %v4443_v56, %v4286_v25  ;;  %v1454_v56 = vadd.f32 %v4286_v25, %v4446_v60 }
 0x1ca   :  { %5379 = vst [vmem:[#allocation28_spill] sm:$0xff] %v4638_v32  ;;  %v4642_v39 = vpop.f32.mrb[54].mxu1  ;;  %1874 = vadd.xlane.f32.xlu0 %v1873_v13  ;;  %v3655_v32 = vpop.eup %3654 }
 0x1cb   :  { %5380 = vst [vmem:[#allocation29_spill] sm:$0xff] %v4642_v39  ;;  %v4647_v5 = vpop.f32.mrb[55].mxu1  ;;  %2072 = vadd.xlane.f32.xlu1 %v2071_v19  ;;  %v3657_v39 = vpop.eup %3656  ;;  %v1879_v19 = vsel %vm130_vm1, %v1711_v30, 0.0  ;;  %v1778_v38 = vmul.f32 %v3655_v32, %v4305_v49  ;;  %v1882_v30 = vsel %vm130_vm1, %v1712_v2, 0.0  ;;  %3674 = vtanh.f32 %v1455_v58 }
 0x1cc   :  { %v4651_v20 = vpop.f32.mrb[54].mxu0  ;;  %v1777_v32 = vmul.f32 %v3657_v39, %v4305_v49  ;;  %v1520_v39 = vadd.f32 %v4286_v25, %v4455_v4  ;;  %3676 = vtanh.f32 %v1454_v56  ;;  %v1521_v4 = vadd.f32 %v4450_v61, %v4286_v25 }
 0x1cd   :  { %5381 = vst [vmem:[#allocation30_spill] sm:$0xff] %v4651_v20  ;;  %v4654_v54 = vpop.f32.mrb[55].mxu0  ;;  %v3659_v20 = vpop.eup %3658 }
 0x1ce   :  { %v4658_v53 = vpop.f32.mrb[56].mxu1  ;;  %2075 = vadd.xlane.f32.xlu0 %v2074_v22  ;;  %v1714_v47 = vmul.f32 %v3659_v20, %v4305_v49  ;;  %3678 = vtanh.f32 %v1520_v39 }
 0x1cf   :  { %5382 = vst [vmem:[#allocation31_spill] sm:$0xff] %v4658_v53  ;;  %v4663_v13 = vpop.f32.mrb[57].mxu1  ;;  %1880 = vadd.xlane.f32.xlu1 %v1879_v19  ;;  %v3661_v53 = vpop.eup %3660  ;;  %v2080_v19 = vsel %vm130_vm1, %v1778_v38, 0.0  ;;  %v2077_v38 = vsel %vm130_vm1, %v1777_v32, 0.0  ;;  %3680 = vtanh.f32 %v1521_v4 }
 0x1d0   :  { %5383 = vst [vmem:[#allocation32_spill] sm:$0xff] %v4663_v13  ;;  %v4667_v24 = vpop.f32.mrb[56].mxu0  ;;  %v3663_v13 = vpop.eup %3662  ;;  %v1713_v20 = vmul.f32 %v3661_v53, %v4305_v49  ;;  %v1456_v53 = vadd.f32 %v4286_v25, %v4462_v15  ;;  %v1457_v15 = vadd.f32 %v4459_v10, %v4286_v25  ;;  %v1522_v10 = vadd.f32 %v4286_v25, %v4471_v21 }
 0x1d1   :  { %v4670_v0 = vpop.f32.mrb[57].mxu0  ;;  %v1780_v60 = vmul.f32 %v3663_v13, %v4305_v49  ;;  %v1458_v21 = vadd.f32 %v4286_v25, %v4478_v34  ;;  %v1524_v34 = vadd.f32 %v4286_v25, %v4487_v43  ;;  %v1460_v43 = vadd.f32 %v4286_v25, %v4494_v50 }
 0x1d2   :  { %v4674_v26 = vpop.f32.mrb[58].mxu1  ;;  %1883 = vadd.xlane.f32.xlu0 %v1882_v30  ;;  %3682 = vtanh.f32 %v1456_v53 }
 0x1d3   :  { %v4679_v22 = vpop.f32.mrb[59].mxu1  ;;  %2081 = vadd.xlane.f32.xlu1 %v2080_v19  ;;  %v1888_v19 = vsel %vm130_vm1, %v1714_v47, 0.0  ;;  %v1885_v47 = vsel %vm130_vm1, %v1713_v20, 0.0  ;;  %3684 = vtanh.f32 %v1457_v15 }
 0x1d4   :  { %v4683_v35 = vpop.f32.mrb[58].mxu0 }
 0x1d5   :  { %5384 = vst [vmem:[#allocation33_spill] sm:$0xff] %v4683_v35  ;;  %v4686_v57 = vpop.f32.mrb[59].mxu0  ;;  %v3665_v35 = vpop.eup %3664 }
 0x1d6   :  { %5385 = vst [vmem:[#allocation34_spill] sm:$0xff] %v4686_v57  ;;  %v4690_v2 = vpop.f32.mrb[60].mxu1  ;;  %2078 = vadd.xlane.f32.xlu0 %v2077_v38  ;;  %v3667_v57 = vpop.eup %3666  ;;  %v1779_v13 = vmul.f32 %v3665_v35, %v4305_v49  ;;  %v1523_v35 = vadd.f32 %v4466_v17, %v4286_v25  ;;  %v1459_v17 = vadd.f32 %v4475_v31, %v4286_v25 }
 0x1d7   :  { %5386 = vst [vmem:[#allocation35_spill] sm:$0xff] %v4690_v2  ;;  %v4695_v30 = vpop.f32.mrb[61].mxu1  ;;  %1889 = vadd.xlane.f32.xlu1 %v1888_v19  ;;  %v3669_v2 = vpop.eup %3668  ;;  %v2086_v19 = vsel %vm130_vm1, %v1780_v60, 0.0  ;;  %v1716_v61 = vmul.f32 %v3667_v57, %v4305_v49  ;;  %v1525_v31 = vadd.f32 %v4482_v52, %v4286_v25  ;;  %v1461_v52 = vadd.f32 %v4491_v42, %v4286_v25 }
 0x1d8   :  { %v4699_v40 = vpop.f32.mrb[60].mxu0  ;;  %v2083_v60 = vsel %vm130_vm1, %v1779_v13, 0.0  ;;  %v1715_v57 = vmul.f32 %v3669_v2, %v4305_v49  ;;  %3686 = vtanh.f32 %v1523_v35  ;;  %v1527_v42 = vadd.f32 %v4498_v7, %v4286_v25 }
 0x1d9   :  { %v4702_v58 = vpop.f32.mrb[61].mxu0  ;;  %3688 = vtanh.f32 %v1522_v10 }
 0x1da   :  { %5387 = vst [vmem:[#allocation36_spill] sm:$0xff] %v4702_v58  ;;  %v4706_v32 = vpop.f32.mrb[62].mxu1  ;;  %1886 = vadd.xlane.f32.xlu0 %v1885_v47  ;;  %v3671_v58 = vpop.eup %3670  ;;  %v1891_v53 = vsel %vm130_vm1, %v1715_v57, 0.0  ;;  %3690 = vtanh.f32 %v1459_v17 }
 0x1db   :  { %5388 = vst [vmem:[#allocation37_spill] sm:$0xff] %v4706_v32  ;;  %v4711_v38 = vpop.f32.mrb[63].mxu1  ;;  %2087 = vadd.xlane.f32.xlu1 %v2086_v19  ;;  %v3673_v32 = vpop.eup %3672  ;;  %v1894_v19 = vsel %vm130_vm1, %v1716_v61, 0.0  ;;  %v1782_v4 = vmul.f32 %v3671_v58, %v4305_v49  ;;  %3692 = vtanh.f32 %v1458_v21 }
 0x1dc   :  { %5389 = vst [vmem:[#allocation38_spill] sm:$0xff] %v4711_v38  ;;  %v4715_v56 = vpop.f32.mrb[62].mxu0  ;;  %v3675_v38 = vpop.eup %3674  ;;  %v1781_v2 = vmul.f32 %v3673_v32, %v4305_v49  ;;  %3694 = vtanh.f32 %v1525_v31 }
 0x1dd   :  { %v4718_v39 = vpop.f32.mrb[63].mxu0  ;;  %v3677_v13 = vpop.eup %3676  ;;  %v2092_v61 = vsel %vm130_vm1, %v1782_v4, 0.0  ;;  %v1718_v58 = vmul.f32 %v3675_v38, %v4305_v49  ;;  %3696 = vtanh.f32 %v1524_v34 }
 0x1de   :  { %v4722_v20 = vpop.f32.mrb[64].mxu1  ;;  %2084 = vadd.xlane.f32.xlu0 %v2083_v60  ;;  %v3679_v60 = vpop.eup %3678  ;;  %v2089_v15 = vsel %vm130_vm1, %v1781_v2, 0.0  ;;  %v1717_v32 = vmul.f32 %v3677_v13, %v4305_v49  ;;  %3698 = vtanh.f32 %v1461_v52 }
 0x1df   :  { %v4727_v47 = vpop.f32.mrb[65].mxu1  ;;  %1895 = vadd.xlane.f32.xlu1 %v1894_v19  ;;  %v3681_v35 = vpop.eup %3680  ;;  %v1900_v57 = vsel %vm130_vm1, %v1718_v58, 0.0  ;;  %v1783_v38 = vmul.f32 %v3679_v60, %v4305_v49  ;;  %3700 = vtanh.f32 %v1460_v43  ;;  %v4787_v43 = vld [vmem:[#allocation12] ss:$0 sm:$0xff] }
 0x1e0   :  { %v3683_v19 = vpop.eup %3682  ;;  %v1897_v4 = vsel %vm130_vm1, %v1717_v32, 0.0  ;;  %v1784_v10 = vmul.f32 %v3681_v35, %v4305_v49  ;;  %v4764_v32 = vld [vmem:[#allocation2] sm:$0xff]  ;;  %3702 = vtanh.f32 %v1527_v42 }
 0x1e1   :  { %v3685_v17 = vpop.eup %3684  ;;  %v1719_v2 = vmul.f32 %v3683_v19, %v4305_v49  ;;  %v1526_v50 = vadd.f32 %v4764_v32, %v4503_v44  ;;  %v1463_v25 = vadd.f32 %v4764_v32, %v4507_v12  ;;  %v1462_v44 = vadd.f32 %v4764_v32, %v4510_v18 }
 0x1e2   :  { %1892 = vadd.xlane.f32.xlu0 %v1891_v53  ;;  %v2095_v53 = vsel %vm130_vm1, %v1783_v38, 0.0  ;;  %v3687_v13 = vpop.eup %3686  ;;  %v1720_v58 = vmul.f32 %v3685_v17, %v4305_v49  ;;  %v1528_v12 = vadd.f32 %v4764_v32, %v4519_v28  ;;  %v1529_v18 = vadd.f32 %v4764_v32, %v4514_v48 }
 0x1e3   :  { %2093 = vadd.xlane.f32.xlu1 %v2092_v61  ;;  %v2098_v61 = vsel %vm130_vm1, %v1784_v10, 0.0  ;;  %v3689_v60 = vpop.eup %3688  ;;  %v1903_v21 = vsel %vm130_vm1, %v1719_v2, 0.0  ;;  %v1786_v31 = vmul.f32 %v3687_v13, %v4305_v49  ;;  %3704 = vtanh.f32 %v1526_v50 }
 0x1e4   :  { %v1906_v7 = vsel %vm130_vm1, %v1720_v58, 0.0  ;;  %v1785_v35 = vmul.f32 %v3689_v60, %v4305_v49  ;;  %3706 = vtanh.f32 %v1463_v25  ;;  %v1464_v28 = vadd.f32 %v4764_v32, %v4526_v45 }
 0x1e5   :  { %v2104_v38 = vsel %vm130_vm1, %v1786_v31, 0.0  ;;  %3708 = vtanh.f32 %v1462_v44  ;;  %v1465_v48 = vadd.f32 %v4764_v32, %v4523_v37  ;;  %v1531_v45 = vadd.f32 %v4764_v32, %v4530_v51 }
 0x1e6   :  { %2090 = vadd.xlane.f32.xlu0 %v2089_v15  ;;  %v3691_v15 = vpop.eup %3690  ;;  %v2101_v52 = vsel %vm130_vm1, %v1785_v35, 0.0  ;;  %3710 = vtanh.f32 %v1528_v12  ;;  %v1530_v37 = vadd.f32 %v4764_v32, %v4535_v59  ;;  %v2331_v35 = vlaneseq }
 0x1e7   :  { %1901 = vadd.xlane.f32.xlu1 %v1900_v57  ;;  %v3693_v57 = vpop.eup %3692  ;;  %v1722_v19 = vmul.f32 %v3691_v15, %v4305_v49  ;;  %3712 = vtanh.f32 %v1529_v18  ;;  %v1467_v51 = vadd.f32 %v4764_v32, %v4539_v6  ;;  %v1466_v59 = vadd.f32 %v4764_v32, %v4542_v3 }
 0x1e8   :  { %v3695_v34 = vpop.eup %3694  ;;  %3714 = vtanh.f32 %v1464_v28  ;;  %v1533_v6 = vadd.f32 %v4764_v32, %v4546_v27  ;;  %v1532_v3 = vadd.f32 %v4764_v32, %v4551_v62 }
 0x1e9   :  { %v3697_v10 = vpop.eup %3696  ;;  %v1912_v17 = vsel %vm130_vm1, %v1722_v19, 0.0  ;;  %3716 = vtanh.f32 %v1465_v48 }
 0x1ea   :  { %1898 = vadd.xlane.f32.xlu0 %v1897_v4  ;;  %v1721_v4 = vmul.f32 %v3693_v57, %v4305_v49  ;;  %v3699_v2 = vpop.eup %3698  ;;  %v1787_v42 = vmul.f32 %v4787_v43, %v3697_v10  ;;  %3718 = vtanh.f32 %v1531_v45 }
 0x1eb   :  { %2096 = vadd.xlane.f32.xlu1 %v2095_v53  ;;  %v1788_v53 = vmul.f32 %v3695_v34, %v4305_v49  ;;  %v1724_v58 = vmul.f32 %v4787_v43, %v3699_v2  ;;  %3720 = vtanh.f32 %v1530_v37 }
 0x1ec   :  { %v1909_v13 = vsel %vm130_vm1, %v1721_v4, 0.0  ;;  %v2334_v4 = vshrl.u32 %v2331_v35, 7  ;;  %3722 = vtanh.f32 %v1467_v51 }
 0x1ed   :  { %v2110_v49 = vsel %vm130_vm1, %v1788_v53, 0.0  ;;  %v1918_v50 = vsel %vm130_vm1, %v1724_v58, 0.0  ;;  %3724 = vtanh.f32 %v1466_v59 }
 0x1ee   :  { %2099 = vadd.xlane.f32.xlu0 %v2098_v61  ;;  %v3701_v61 = vpop.eup %3700  ;;  %3726 = vtanh.f32 %v1533_v6 }
 0x1ef   :  { %1904 = vadd.xlane.f32.xlu1 %v1903_v21  ;;  %v3703_v60 = vpop.eup %3702  ;;  %v2107_v21 = vsel %vm130_vm1, %v1787_v42, 0.0  ;;  %v1723_v31 = vmul.f32 %v4787_v43, %v3701_v61  ;;  %3728 = vtanh.f32 %v1532_v3 }
 0x1f0   :  { %v3705_v15 = vpop.eup %3704  ;;  %v1790_v25 = vmul.f32 %v4787_v43, %v3703_v60 }
 0x1f1   :  { %v1915_v57 = vsel %vm130_vm1, %v1723_v31, 0.0 }
 0x1f2   :  { %1907 = vadd.xlane.f32.xlu0 %v1906_v7  ;;  %v3707_v7 = vpop.eup %3706  ;;  %v2116_v34 = vsel %vm130_vm1, %v1790_v25, 0.0 }
 0x1f3   :  { %2105 = vadd.xlane.f32.xlu1 %v2104_v38  ;;  %v1789_v38 = vmul.f32 %v4787_v43, %v3705_v15  ;;  %v3709_v19 = vpop.eup %3708  ;;  %v1726_v44 = vmul.f32 %v4787_v43, %v3707_v7  ;;  %v1468_v15 = vadd.f32 %v4764_v32, %v4558_v1  ;;  %v1535_v7 = vadd.f32 %v4764_v32, %v4562_v36 }
 0x1f4   :  { %v3711_v12 = vpop.eup %3710  ;;  %v1725_v53 = vmul.f32 %v4787_v43, %v3709_v19  ;;  %v1471_v36 = vadd.f32 %v4764_v32, %v4571_v55  ;;  %v1470_v55 = vadd.f32 %v4764_v32, %v4574_v14 }
 0x1f5   :  { %v3713_v2 = vpop.eup %3712  ;;  %v1924_v18 = vsel %vm130_vm1, %v1726_v44, 0.0  ;;  %v1791_v28 = vmul.f32 %v4787_v43, %v3711_v12 }
 0x1f6   :  { %2102 = vadd.xlane.f32.xlu0 %v2101_v52  ;;  %v2332_v52 = vand.u32 127, %v2331_v35  ;;  %v1921_v58 = vsel %vm130_vm1, %v1725_v53, 0.0  ;;  %v1792_v60 = vmul.f32 %v4787_v43, %v3713_v2 }
 0x1f7   :  { %1913 = vadd.xlane.f32.xlu1 %v1912_v17  ;;  %v2113_v17 = vsel %vm130_vm1, %v1789_v38, 0.0  ;;  %v2119_v45 = vsel %vm130_vm1, %v1791_v28, 0.0  ;;  %v1536_v28 = vadd.f32 %v4764_v32, %v4583_v33 }
 0x1f8   :  { %v4818_v61 = vsub.s32 %v2332_v52, %v2334_v4  ;;  %v2122_v37 = vsel %vm130_vm1, %v1792_v60, 0.0 }
 0x1fa   :  { %1910 = vadd.xlane.f32.xlu0 %v1909_v13  ;;  %v3715_v13 = vpop.eup %3714 }
 0x1fb   :  { %2111 = vadd.xlane.f32.xlu1 %v2110_v49  ;;  %v1469_v49 = vadd.f32 %v4764_v32, %v4555_v16  ;;  %v3717_v48 = vpop.eup %3716 }
 0x1fc   :  { %v3719_v31 = vpop.eup %3718  ;;  %v1728_v35 = vmul.f32 %v4787_v43, %v3717_v48 }
 0x1fd   :  { %3730 = vtanh.f32 %v1469_v49  ;;  %v3721_v51 = vpop.eup %3720  ;;  %v1794_v38 = vmul.f32 %v4787_v43, %v3719_v31 }
 0x1fe   :  { %2108 = vadd.xlane.f32.xlu0 %v2107_v21  ;;  %v1727_v21 = vmul.f32 %v4787_v43, %v3715_v13  ;;  %v3723_v19 = vpop.eup %3722  ;;  %3732 = vtanh.f32 %v1468_v15  ;;  %v1930_v4 = vsel %vm130_vm1, %v1728_v35, 0.0  ;;  %v1793_v6 = vmul.f32 %v4787_v43, %v3721_v51 }
 0x1ff   :  { %1919 = vadd.xlane.f32.xlu1 %v1918_v50  ;;  %3734 = vtanh.f32 %v1535_v7  ;;  %v1730_v2 = vmul.f32 %v4787_v43, %v3723_v19 }
 0x200   :  { %v1927_v1 = vsel %vm130_vm1, %v1727_v21, 0.0  ;;  %v2125_v49 = vsel %vm130_vm1, %v1793_v6, 0.0 }
 0x201   :  { %v1936_v33 = vsel %vm130_vm1, %v1730_v2, 0.0 }
 0x202   :  { %1916 = vadd.xlane.f32.xlu0 %v1915_v57 }
 0x203   :  { %2117 = vadd.xlane.f32.xlu1 %v2116_v34  ;;  %v1534_v34 = vadd.f32 %v4764_v32, %v4567_v23  ;;  %v2128_v23 = vsel %vm130_vm1, %v1794_v38, 0.0 }
 0x204   :  { %v2016_v10 = vpop.xlane.xlu1 %2015 }
 0x205   :  { %v2596_v12 = vrot.slane %v2016_v10, %v4818_v61  ;;  %3736 = vtanh.f32 %v1534_v34 }
 0x206   :  { %2114 = vadd.xlane.f32.xlu0 %v2113_v17  ;;  %v3725_v17 = vpop.eup %3724  ;;  %3738 = vtanh.f32 %v1471_v36 }
 0x207   :  { %v1821_v42 = vpop.xlane.xlu0 %1820  ;;  %1925 = vadd.xlane.f32.xlu1 %v1924_v18  ;;  %v3727_v18 = vpop.eup %3726  ;;  %v1729_v14 = vmul.f32 %v4787_v43, %v3725_v17  ;;  %3740 = vtanh.f32 %v1470_v55  ;;  %v1475_v17 = vadd.f32 %v4764_v32, %v4603_v63  ;;  %v1541_v63 = vadd.f32 %v4764_v32, %v4610_v46 }
 0x208   :  { %v4820_v27 = vpop.xlane.xlu1 %2021  ;;  %v2336_v16 = vrot.slane %v1821_v42, %v4818_v61  ;;  %v3729_v60 = vpop.eup %3728  ;;  %v1796_v21 = vmul.f32 %v4787_v43, %v3727_v18  ;;  %3742 = vtanh.f32 %v1536_v28  ;;  %v1477_v46 = vadd.f32 %v4764_v32, %v4619_v8 }
 0x209   :  { %v2604_v3 = vrot.slane %v4820_v27, %v4818_v61  ;;  %v3731_v31 = vpop.eup %3730  ;;  %v1537_v27 = vadd.f32 %v4764_v32, %v4578_v29  ;;  %v1933_v51 = vsel %vm130_vm1, %v1729_v14, 0.0 }
 0x20a   :  { %1922 = vadd.xlane.f32.xlu0 %v1921_v58  ;;  %v3733_v38 = vpop.eup %3732  ;;  %v1732_v19 = vmul.f32 %v4787_v43, %v3731_v31 }
 0x20b   :  { %v1824_v62 = vpop.xlane.xlu0 %1823  ;;  %2120 = vadd.xlane.f32.xlu1 %v2119_v45  ;;  %v3735_v34 = vpop.eup %3734  ;;  %3744 = vtanh.f32 %v1537_v27 }
 0x20c   :  { %v2340_v50 = vrot.slane %v1824_v62, %v4818_v61  ;;  %v4832_v25 = vpop.xlane.xlu1 %2009  ;;  %v1942_v18 = vsel %vm130_vm1, %v1732_v19, 0.0  ;;  %v1798_v55 = vmul.f32 %v4787_v43, %v3735_v34  ;;  %v1543_v19 = vadd.f32 %v4764_v32, %v4626_v41 }
 0x20e   :  { %v2846_v57 = vsel %vm2845_vm2, %v2340_v50, %v2336_v16  ;;  %2123 = vadd.xlane.f32.xlu0 %v2122_v37  ;;  %v5390_v50 = vld [vmem:[#allocation22_spill] sm:$0xff]  ;;  %v2140_v14 = vsel %vm130_vm1, %v1798_v55, 0.0 }
 0x20f   :  { %v2013_v44 = vpop.xlane.xlu0 %2012  ;;  %1928 = vadd.xlane.f32.xlu1 %v1927_v1  ;;  %v1472_v7 = vadd.f32 %v4764_v32, %v5390_v50  ;;  %v1795_v1 = vmul.f32 %v4787_v43, %v3729_v60  ;;  %v3737_v6 = vpop.eup %3736 }
 0x210   :  { %v2592_v59 = vrot.slane %v2013_v44, %v4818_v61  ;;  %v1830_v52 = vpop.xlane.xlu1 %1829  ;;  %v3739_v2 = vpop.eup %3738 }
 0x211   :  { %v2348_v45 = vrot.slane %v1830_v52, %v4818_v61  ;;  %3746 = vtanh.f32 %v1472_v7  ;;  %v1734_v60 = vmul.f32 %v4787_v43, %v3739_v2 }
 0x212   :  { %v2908_v53 = vsel %vm2845_vm2, %v2596_v12, %v2592_v59  ;;  %1931 = vadd.xlane.f32.xlu0 %v1930_v4  ;;  %v5391_v12 = vld [vmem:[#allocation21_spill] sm:$0xff] }
 0x213   :  { %v2019_v10 = vpop.xlane.xlu0 %2018  ;;  %2129 = vadd.xlane.f32.xlu1 %v2128_v23  ;;  %v1473_v59 = vadd.f32 %v4764_v32, %v5391_v12  ;;  %v1731_v23 = vmul.f32 %v4787_v43, %v3733_v38 }
 0x214   :  { %v2600_v13 = vrot.slane %v2019_v10, %v4818_v61  ;;  %v1827_v42 = vpop.xlane.xlu1 %1826 }
 0x215   :  { %v2344_v58 = vrot.slane %v1827_v42, %v4818_v61  ;;  %3748 = vtanh.f32 %v1473_v59 }
 0x216   :  { %v2909_v48 = vsel %vm2847_vm3, %v2600_v13, %v2908_v53  ;;  %2126 = vadd.xlane.f32.xlu0 %v2125_v49  ;;  %v2131_v53 = vsel %vm130_vm1, %v1795_v1, 0.0  ;;  %v1538_v13 = vadd.f32 %v4764_v32, %v4599_v11  ;;  %3750 = vtanh.f32 %v1475_v17  ;;  %v5392_v11 = vld [vmem:[#allocation24_spill] sm:$0xff] }
 0x217   :  { %v4868_v62 = vpop.xlane.xlu0 %2006  ;;  %v2848_v15 = vsel %vm2847_vm3, %v2344_v58, %v2846_v57  ;;  %1937 = vadd.xlane.f32.xlu1 %v1936_v33  ;;  %v2910_v16 = vsel %vm2849_vm4, %v2604_v3, %v2909_v48  ;;  %v2134_v57 = vsel %vm130_vm1, %v1796_v21, 0.0  ;;  %v1939_v3 = vsel %vm130_vm1, %v1731_v23, 0.0  ;;  %v3741_v58 = vpop.eup %3740 }
 0x218   :  { %v2025_v37 = vpop.xlane.xlu1 %2024  ;;  %v2850_v35 = vsel %vm2849_vm4, %v2348_v45, %v2848_v15  ;;  %v1797_v49 = vmul.f32 %v4787_v43, %v3737_v6  ;;  %v3743_v48 = vpop.eup %3742  ;;  %3752 = vtanh.f32 %v1538_v13  ;;  %v1474_v33 = vadd.f32 %v4764_v32, %v5392_v11 }
 0x219   :  { %v2608_v29 = vrot.slane %v2025_v37, %v4818_v61  ;;  %3754 = vtanh.f32 %v1541_v63  ;;  %v3745_v50 = vpop.eup %3744  ;;  %v1948_v37 = vsel %vm130_vm1, %v1734_v60, 0.0 }
 0x21a   :  { %1934 = vadd.xlane.f32.xlu0 %v1933_v51  ;;  %v2137_v15 = vsel %vm130_vm1, %v1797_v49, 0.0  ;;  %v1799_v51 = vmul.f32 %v4787_v43, %v3743_v48  ;;  %3756 = vtanh.f32 %v1474_v33  ;;  %v1800_v12 = vmul.f32 %v4787_v43, %v3745_v50 }
 0x21b   :  { %v2028_v44 = vpop.xlane.xlu0 %2027  ;;  %v2911_v36 = vsel %vm2851_vm5, %v2608_v29, %v2910_v16  ;;  %2135 = vadd.xlane.f32.xlu1 %v2134_v57  ;;  %v1733_v16 = vmul.f32 %v4787_v43, %v3741_v58  ;;  %v3747_v8 = vpop.eup %3746  ;;  %v5393_v29 = vld [vmem:[#allocation25_spill] sm:$0xff]  ;;  %3758 = vtanh.f32 %v1477_v46 }
 0x21c   :  { %v2612_v52 = vrot.slane %v2028_v44, %v4818_v61  ;;  %v4884_v4 = vpop.xlane.xlu1 %2033  ;;  %v1540_v1 = vadd.f32 %v4764_v32, %v5393_v29  ;;  %v1735_v6 = vmul.f32 %v4787_v43, %v3747_v8  ;;  %v2146_v13 = vsel %vm130_vm1, %v1800_v12, 0.0 }
 0x21d   :  { %v2620_v44 = vrot.slane %v4884_v4, %v4818_v61  ;;  %v5394_v4 = vld [vmem:[#allocation26_spill] sm:$0xff] }
 0x21e   :  { %2132 = vadd.xlane.f32.xlu0 %v2131_v53  ;;  %v2912_v10 = vsel %vm2853_vm6, %v2612_v52, %v2911_v36  ;;  %v1945_v36 = vsel %vm130_vm1, %v1733_v16, 0.0  ;;  %v2143_v52 = vsel %vm130_vm1, %v1799_v51, 0.0  ;;  %3760 = vtanh.f32 %v1540_v1  ;;  %v5396_v51 = vld [vmem:[#allocation28_spill] sm:$0xff] }
 0x21f   :  { %v1836_v28 = vpop.xlane.xlu0 %1835  ;;  %1943 = vadd.xlane.f32.xlu1 %v1942_v18  ;;  %v3749_v59 = vpop.eup %3748  ;;  %v1476_v2 = vadd.f32 %v4764_v32, %v5394_v4  ;;  %v1479_v18 = vadd.f32 %v4764_v32, %v4635_v9  ;;  %3762 = vtanh.f32 %v1543_v19  ;;  %v1951_v49 = vsel %vm130_vm1, %v1735_v6, 0.0  ;;  %v5397_v6 = vld [vmem:[#allocation30_spill] sm:$0xff] }
 0x220   :  { %v4895_v42 = vpop.xlane.xlu1 %1841  ;;  %v2356_v27 = vrot.slane %v1836_v28, %v4818_v61  ;;  %v3751_v17 = vpop.eup %3750  ;;  %v1736_v63 = vmul.f32 %v4787_v43, %v3749_v59  ;;  %v1478_v8 = vadd.f32 %v4764_v32, %v5396_v51  ;;  %v1483_v4 = vadd.f32 %v4764_v32, %v4667_v24 }
 0x221   :  { %v1738_v58 = vmul.f32 %v4787_v43, %v3751_v17  ;;  %3764 = vtanh.f32 %v1476_v2  ;;  %v1548_v51 = vadd.f32 %v4764_v32, %v4679_v22 }
 0x222   :  { %1940 = vadd.xlane.f32.xlu0 %v1939_v3  ;;  %v3753_v3 = vpop.eup %3752  ;;  %3766 = vtanh.f32 %v1479_v18 }
 0x223   :  { %v1833_v45 = vpop.xlane.xlu0 %1832  ;;  %2141 = vadd.xlane.f32.xlu1 %v2140_v14  ;;  %v3755_v14 = vpop.eup %3754 }
 0x224   :  { %v2352_v21 = vrot.slane %v1833_v45, %v4818_v61  ;;  %v4908_v31 = vpop.xlane.xlu1 %2039  ;;  %v3757_v16 = vpop.eup %3756 }
 0x225   :  { %v2628_v11 = vrot.slane %v4908_v31, %v4818_v61  ;;  %v3759_v31 = vpop.eup %3758 }
 0x226   :  { %v2852_v7 = vsel %vm2851_vm5, %v2352_v21, %v2850_v35  ;;  %2138 = vadd.xlane.f32.xlu0 %v2137_v15  ;;  %v1544_v21 = vadd.f32 %v4764_v32, %v4647_v5  ;;  %v1801_v15 = vmul.f32 %v4787_v43, %v3753_v3  ;;  %v1480_v5 = vadd.f32 %v4764_v32, %v4654_v54 }
 0x227   :  { %v2031_v38 = vpop.xlane.xlu0 %2030  ;;  %1949 = vadd.xlane.f32.xlu1 %v1948_v37  ;;  %v2854_v57 = vsel %vm2853_vm6, %v2356_v27, %v2852_v7  ;;  %v1954_v27 = vsel %vm130_vm1, %v1736_v63, 0.0  ;;  %v1960_v7 = vsel %vm130_vm1, %v1738_v58, 0.0  ;;  %v1804_v37 = vmul.f32 %v4787_v43, %v3755_v14 }
 0x228   :  { %v2616_v35 = vrot.slane %v2031_v38, %v4818_v61  ;;  %v4922_v34 = vpop.xlane.xlu1 %1847  ;;  %v2149_v19 = vsel %vm130_vm1, %v1801_v15, 0.0 }
 0x229   :  { %v2372_v1 = vrot.slane %v4922_v34, %v4818_v61  ;;  %v2158_v54 = vsel %vm130_vm1, %v1804_v37, 0.0  ;;  %v1740_v34 = vmul.f32 %v4787_v43, %v3759_v31 }
 0x22a   :  { %1946 = vadd.xlane.f32.xlu0 %v1945_v36  ;;  %v2913_v41 = vsel %vm2855_vm7, %v2616_v35, %v2912_v10  ;;  %v2364_v10 = vrot.slane %v4895_v42, %v4818_v61  ;;  %v5395_v42 = vld [vmem:[#allocation27_spill] sm:$0xff]  ;;  %v3761_v36 = vpop.eup %3760 }
 0x22b   :  { %v1839_v53 = vpop.xlane.xlu0 %1838  ;;  %2144 = vadd.xlane.f32.xlu1 %v2143_v52  ;;  %v4932_v23 = vsel %vm2857_vm8, %v2620_v44, %v2913_v41  ;;  %v1542_v45 = vadd.f32 %v4764_v32, %v5395_v42  ;;  %v1737_v44 = vmul.f32 %v4787_v43, %v3757_v16  ;;  %v3763_v52 = vpop.eup %3762  ;;  %v1481_v41 = vadd.f32 %v4764_v32, %v5397_v6 }
 0x22c   :  { %v2360_v55 = vrot.slane %v1839_v53, %v4818_v61  ;;  %v4939_v28 = vpop.xlane.xlu1 %2045  ;;  %v1803_v3 = vmul.f32 %v4787_v43, %v3761_v36  ;;  %v1966_v24 = vsel %vm130_vm1, %v1740_v34, 0.0 }
 0x22d   :  { %3768 = vtanh.f32 %v1542_v45  ;;  %v1549_v45 = vadd.f32 %v4764_v32, %v4674_v26 }
 0x22e   :  { %2147 = vadd.xlane.f32.xlu0 %v2146_v13  ;;  %v2856_v9 = vsel %vm2855_vm7, %v2360_v55, %v2854_v57  ;;  %3770 = vtanh.f32 %v1544_v21  ;;  %v1957_v13 = vsel %vm130_vm1, %v1737_v44, 0.0  ;;  %v2155_v21 = vsel %vm130_vm1, %v1803_v3, 0.0 }
 0x22f   :  { %v2037_v60 = vpop.xlane.xlu0 %2036  ;;  %1952 = vadd.xlane.f32.xlu1 %v1951_v49  ;;  %v4949_v48 = vsel %vm2857_vm8, %v2364_v10, %v2856_v9  ;;  %3772 = vtanh.f32 %v1478_v8  ;;  %v2636_v10 = vrot.slane %v4939_v28, %v4818_v61  ;;  %v3765_v49 = vpop.eup %3764  ;;  %v1806_v9 = vmul.f32 %v4787_v43, %v3763_v52 }
 0x230   :  { %v2624_v33 = vrot.slane %v2037_v60, %v4818_v61  ;;  %v1854_v46 = vpop.xlane.xlu1 %1853  ;;  %3774 = vtanh.f32 %v1480_v5  ;;  %v3767_v14 = vpop.eup %3766  ;;  %v1482_v60 = vadd.f32 %v4764_v32, %v4670_v0  ;;  %v1739_v0 = vmul.f32 %v4787_v43, %v3765_v49 }
 0x231   :  { %v2380_v59 = vrot.slane %v1854_v46, %v4818_v61  ;;  %3776 = vtanh.f32 %v1481_v41  ;;  %v2164_v16 = vsel %vm130_vm1, %v1806_v9, 0.0  ;;  %v1487_v52 = vadd.f32 %v4764_v32, %v4699_v40 }
 0x232   :  { %v2915_v50 = vsel %vm2845_vm2, %v2628_v11, %v2624_v33  ;;  %1955 = vadd.xlane.f32.xlu0 %v1954_v27  ;;  %3778 = vtanh.f32 %v1483_v4 }
 0x233   :  { %v1845_v29 = vpop.xlane.xlu0 %1844  ;;  %1961 = vadd.xlane.f32.xlu1 %v1960_v7  ;;  %3780 = vtanh.f32 %v1482_v60 }
 0x234   :  { %v2368_v38 = vrot.slane %v1845_v29, %v4818_v61  ;;  %v1851_v57 = vpop.xlane.xlu1 %1850  ;;  %3782 = vtanh.f32 %v1549_v45 }
 0x235   :  { %v2376_v35 = vrot.slane %v1851_v57, %v4818_v61  ;;  %v1963_v57 = vsel %vm130_vm1, %v1739_v0, 0.0  ;;  %3784 = vtanh.f32 %v1548_v51 }
 0x236   :  { %v2859_v12 = vsel %vm2845_vm2, %v2372_v1, %v2368_v38  ;;  %2150 = vadd.xlane.f32.xlu0 %v2149_v19  ;;  %v5398_v1 = vld [vmem:[#allocation33_spill] sm:$0xff] }
 0x237   :  { %v2043_v17 = vpop.xlane.xlu0 %2042  ;;  %v2860_v53 = vsel %vm2847_vm3, %v2376_v35, %v2859_v12  ;;  %2159 = vadd.xlane.f32.xlu1 %v2158_v54  ;;  %v3769_v15 = vpop.eup %3768  ;;  %v1485_v38 = vadd.f32 %v4764_v32, %v5398_v1 }
 0x238   :  { %v2632_v2 = vrot.slane %v2043_v17, %v4818_v61  ;;  %v2049_v18 = vpop.xlane.xlu1 %2048  ;;  %v2861_v55 = vsel %vm2849_vm4, %v2380_v59, %v2860_v53  ;;  %v3771_v7 = vpop.eup %3770  ;;  %v1805_v19 = vmul.f32 %v4787_v43, %v3769_v15  ;;  %v5399_v59 = vld [vmem:[#allocation34_spill] sm:$0xff] }
 0x239   :  { %v2640_v63 = vrot.slane %v2049_v18, %v4818_v61  ;;  %v3773_v5 = vpop.eup %3772  ;;  %v1807_v36 = vmul.f32 %v4787_v43, %v3771_v7  ;;  %v1484_v54 = vadd.f32 %v4764_v32, %v5399_v59  ;;  %3786 = vtanh.f32 %v1485_v38 }
 0x23a   :  { %v2916_v58 = vsel %vm2847_vm3, %v2632_v2, %v2915_v50  ;;  %1958 = vadd.xlane.f32.xlu0 %v1957_v13  ;;  %v1742_v50 = vmul.f32 %v4787_v43, %v3767_v14  ;;  %v3775_v35 = vpop.eup %3774  ;;  %v2161_v6 = vsel %vm130_vm1, %v1805_v19, 0.0  ;;  %v1741_v41 = vmul.f32 %v4787_v43, %v3773_v5  ;;  %v5402_v5 = vld [vmem:[#allocation35_spill] sm:$0xff] }
 0x23b   :  { %v2052_v42 = vpop.xlane.xlu0 %2051  ;;  %v2917_v28 = vsel %vm2849_vm4, %v2636_v10, %v2916_v58  ;;  %1967 = vadd.xlane.f32.xlu1 %v1966_v24  ;;  %v3777_v17 = vpop.eup %3776  ;;  %v2167_v53 = vsel %vm130_vm1, %v1807_v36, 0.0  ;;  %v1743_v4 = vmul.f32 %v4787_v43, %v3775_v35  ;;  %3788 = vtanh.f32 %v1484_v54  ;;  %v5403_v54 = vld [vmem:[#allocation29_spill] sm:$0xff] }
 0x23c   :  { %v2644_v11 = vrot.slane %v2052_v42, %v4818_v61  ;;  %v2918_v33 = vsel %vm2851_vm5, %v2640_v63, %v2917_v28  ;;  %v1857_v46 = vpop.xlane.xlu1 %1856  ;;  %v1972_v44 = vsel %vm130_vm1, %v1742_v50, 0.0  ;;  %v3779_v2 = vpop.eup %3778  ;;  %3790 = vtanh.f32 %v1487_v52 }
 0x23d   :  { %v2384_v27 = vrot.slane %v1857_v46, %v4818_v61  ;;  %v1488_v13 = vadd.f32 %v4764_v32, %v4718_v39  ;;  %v1969_v63 = vsel %vm130_vm1, %v1741_v41, 0.0  ;;  %v1744_v3 = vmul.f32 %v4787_v43, %v3777_v17  ;;  %v3781_v49 = vpop.eup %3780  ;;  %v5400_v39 = vld [vmem:[#allocation36_spill] sm:$0xff]  ;;  %v5404_v17 = vld [vmem:[#allocation38_spill] sm:$0xff] }
 0x23e   :  { %2156 = vadd.xlane.f32.xlu0 %v2155_v21  ;;  %v5005_v26 = vsel %vm2853_vm6, %v2644_v11, %v2918_v33  ;;  %v1975_v24 = vsel %vm130_vm1, %v1743_v4, 0.0  ;;  %v1746_v9 = vmul.f32 %v4787_v43, %v3779_v2  ;;  %v3783_v14 = vpop.eup %3782  ;;  %v1486_v42 = vadd.f32 %v4764_v32, %v5400_v39  ;;  %v5401_v11 = vld [vmem:[#allocation23_spill] sm:$0xff] }
 0x23f   :  { %v1860_v37 = vpop.xlane.xlu0 %1859  ;;  %v2862_v31 = vsel %vm2851_vm5, %v2384_v27, %v2861_v55  ;;  %2165 = vadd.xlane.f32.xlu1 %v2164_v16  ;;  %v1550_v55 = vadd.f32 %v4764_v32, %v4695_v30  ;;  %v1539_v33 = vadd.f32 %v4764_v32, %v5401_v11  ;;  %v1978_v46 = vsel %vm130_vm1, %v1744_v3, 0.0  ;;  %v3785_v27 = vpop.eup %3784 }
 0x240   :  { %v2388_v8 = vrot.slane %v1860_v37, %v4818_v61  ;;  %v5011_v29 = vpop.xlane.xlu1 %2057  ;;  %v1745_v21 = vmul.f32 %v4787_v43, %v3781_v49  ;;  %v1984_v16 = vsel %vm130_vm1, %v1746_v9, 0.0  ;;  %v1812_v50 = vmul.f32 %v4787_v43, %v3783_v14  ;;  %v5406_v9 = vld [vmem:[#allocation37_spill] sm:$0xff] }
 0x241   :  { %3792 = vtanh.f32 %v1550_v55  ;;  %v1551_v1 = vadd.f32 %v4764_v32, %v5402_v5  ;;  %v1545_v52 = vadd.f32 %v4764_v32, %v5403_v54  ;;  %v1553_v14 = vadd.f32 %v4764_v32, %v5406_v9 }
 0x242   :  { %1964 = vadd.xlane.f32.xlu0 %v1963_v57  ;;  %v2863_v22 = vsel %vm2853_vm6, %v2388_v8, %v2862_v31  ;;  %3794 = vtanh.f32 %v1488_v13  ;;  %v1489_v31 = vadd.f32 %v4764_v32, %v4715_v56  ;;  %v1981_v38 = vsel %vm130_vm1, %v1745_v21, 0.0 }
 0x243   :  { %v5020_v12 = vpop.xlane.xlu0 %2054  ;;  %1973 = vadd.xlane.f32.xlu1 %v1972_v44  ;;  %v3787_v7 = vpop.eup %3786  ;;  %3796 = vtanh.f32 %v1486_v42  ;;  %v1811_v57 = vmul.f32 %v4787_v43, %v3785_v27  ;;  %v2182_v44 = vsel %vm130_vm1, %v1812_v50, 0.0  ;;  %v5407_v50 = vld [vmem:[#allocation31_spill] sm:$0xff] }
 0x244   :  { %v5024_v34 = vpop.xlane.xlu1 %1865  ;;  %3798 = vtanh.f32 %v1539_v33  ;;  %v1748_v36 = vmul.f32 %v4787_v43, %v3787_v7  ;;  %v1547_v7 = vadd.f32 %v4764_v32, %v5407_v50 }
 0x245   :  { %v3789_v19 = vpop.eup %3788  ;;  %3800 = vtanh.f32 %v1489_v31  ;;  %v2179_v4 = vsel %vm130_vm1, %v1811_v57, 0.0 }
 0x246   :  { %2162 = vadd.xlane.f32.xlu0 %v2161_v6  ;;  %v3791_v56 = vpop.eup %3790  ;;  %3802 = vtanh.f32 %v1551_v1  ;;  %v1747_v2 = vmul.f32 %v4787_v43, %v3789_v19 }
 0x247   :  { %v1863_v18 = vpop.xlane.xlu0 %1862  ;;  %2168 = vadd.xlane.f32.xlu1 %v2167_v53  ;;  %v1552_v53 = vadd.f32 %v4764_v32, %v5404_v17  ;;  %3804 = vtanh.f32 %v1545_v52 }
 0x248   :  { %v2392_v10 = vrot.slane %v1863_v18, %v4818_v61  ;;  %v2064_v40 = vpop.xlane.xlu1 %2063  ;;  %v1987_v42 = vsel %vm130_vm1, %v1747_v2, 0.0 }
 0x249   :  { %v2660_v58 = vrot.slane %v2064_v40, %v4818_v61  ;;  %v1750_v40 = vmul.f32 %v4787_v43, %v3791_v56  ;;  %3806 = vtanh.f32 %v1552_v53  ;;  %v1554_v56 = vadd.f32 %v4764_v32, %v4727_v47 }
 0x24a   :  { %1970 = vadd.xlane.f32.xlu0 %v1969_v63  ;;  %v5043_v30 = vsel %vm2855_vm7, %v2392_v10, %v2863_v22  ;;  %v1990_v10 = vsel %vm130_vm1, %v1748_v36, 0.0 }
 0x24b   :  { %v2061_v60 = vpop.xlane.xlu0 %2060  ;;  %1976 = vadd.xlane.f32.xlu1 %v1975_v24  ;;  %v3793_v18 = vpop.eup %3792 }
 0x24c   :  { %v2656_v28 = vrot.slane %v2061_v60, %v4818_v61  ;;  %v1872_v45 = vpop.xlane.xlu1 %1871  ;;  %v3795_v13 = vpop.eup %3794 }
 0x24d   :  { %v2404_v15 = vrot.slane %v1872_v45, %v4818_v61  ;;  %v1813_v45 = vmul.f32 %v4787_v43, %v3793_v18  ;;  %v3797_v11 = vpop.eup %3796  ;;  %v1751_v21 = vmul.f32 %v4787_v43, %v3795_v13 }
 0x24e   :  { %v2922_v0 = vsel %vm2845_vm2, %v2660_v58, %v2656_v28  ;;  %1979 = vadd.xlane.f32.xlu0 %v1978_v46  ;;  %v5405_v58 = vld [vmem:[#allocation32_spill] sm:$0xff]  ;;  %v1996_v46 = vsel %vm130_vm1, %v1750_v40, 0.0  ;;  %v3799_v27 = vpop.eup %3798  ;;  %v1749_v1 = vmul.f32 %v4787_v43, %v3797_v11 }
 0x24f   :  { %v1869_v37 = vpop.xlane.xlu0 %1868  ;;  %1985 = vadd.xlane.f32.xlu1 %v1984_v16  ;;  %v1546_v24 = vadd.f32 %v4764_v32, %v5405_v58  ;;  %v1999_v19 = vsel %vm130_vm1, %v1751_v21, 0.0 }
 0x250   :  { %v2400_v51 = vrot.slane %v1869_v37, %v4818_v61  ;;  %v2070_v8 = vpop.xlane.xlu1 %2069  ;;  %v1555_v37 = vadd.f32 %v4764_v32, %v4722_v20  ;;  %v1993_v54 = vsel %vm130_vm1, %v1749_v1, 0.0 }
 0x251   :  { %v2668_v22 = vrot.slane %v2070_v8, %v4818_v61  ;;  %3808 = vtanh.f32 %v1546_v24  ;;  %v2185_v8 = vsel %vm130_vm1, %v1813_v45, 0.0 }
 0x252   :  { %v2866_v35 = vsel %vm2845_vm2, %v2404_v15, %v2400_v51  ;;  %1982 = vadd.xlane.f32.xlu0 %v1981_v38  ;;  %3810 = vtanh.f32 %v1553_v14  ;;  %v3801_v38 = vpop.eup %3800 }
 0x253   :  { %v2067_v59 = vpop.xlane.xlu0 %2066  ;;  %2183 = vadd.xlane.f32.xlu1 %v2182_v44  ;;  %v3803_v44 = vpop.eup %3802  ;;  %3812 = vtanh.f32 %v1547_v7  ;;  %v1752_v52 = vmul.f32 %v4787_v43, %v3801_v38 }
 0x254   :  { %v2664_v6 = vrot.slane %v2067_v59, %v4818_v61  ;;  %v1878_v41 = vpop.xlane.xlu1 %1877  ;;  %3814 = vtanh.f32 %v1555_v37  ;;  %v1814_v17 = vmul.f32 %v4787_v43, %v3803_v44 }
 0x255   :  { %v2412_v63 = vrot.slane %v1878_v41, %v4818_v61  ;;  %3816 = vtanh.f32 %v1554_v56 }
 0x256   :  { %v2923_v55 = vsel %vm2847_vm3, %v2664_v6, %v2922_v0  ;;  %2180 = vadd.xlane.f32.xlu0 %v2179_v4  ;;  %v3805_v6 = vpop.eup %3804  ;;  %v2188_v13 = vsel %vm130_vm1, %v1814_v17, 0.0 }
 0x257   :  { %v1875_v3 = vpop.xlane.xlu0 %1874  ;;  %1991 = vadd.xlane.f32.xlu1 %v1990_v10  ;;  %v2924_v49 = vsel %vm2849_vm4, %v2668_v22, %v2923_v55  ;;  %v3807_v4 = vpop.eup %3806  ;;  %v2002_v55 = vsel %vm130_vm1, %v1752_v52, 0.0  ;;  %v1808_v10 = vmul.f32 %v4787_v43, %v3805_v6 }
 0x258   :  { %v2408_v60 = vrot.slane %v1875_v3, %v4818_v61  ;;  %v2073_v39 = vpop.xlane.xlu1 %2072 }
 0x259   :  { %v2672_v28 = vrot.slane %v2073_v39, %v4818_v61  ;;  %v2170_v14 = vsel %vm130_vm1, %v1808_v10, 0.0 }
 0x25a   :  { %v2867_v33 = vsel %vm2847_vm3, %v2408_v60, %v2866_v35  ;;  %1988 = vadd.xlane.f32.xlu0 %v1987_v42  ;;  %v1802_v35 = vmul.f32 %v4787_v43, %v3799_v27 }
 0x25b   :  { %v2925_v0 = vsel %vm2851_vm5, %v2672_v28, %v2924_v49  ;;  %v2076_v15 = vpop.xlane.xlu0 %2075  ;;  %1997 = vadd.xlane.f32.xlu1 %v1996_v46  ;;  %v2868_v16 = vsel %vm2849_vm4, %v2412_v63, %v2867_v33  ;;  %v3809_v40 = vpop.eup %3808  ;;  %v1815_v63 = vmul.f32 %v4787_v43, %v3807_v4 }
 0x25c   :  { %v2676_v31 = vrot.slane %v2076_v15, %v4818_v61  ;;  %v1881_v51 = vpop.xlane.xlu1 %1880  ;;  %v2152_v41 = vsel %vm130_vm1, %v1802_v35, 0.0  ;;  %v3811_v49 = vpop.eup %3810  ;;  %v1809_v60 = vmul.f32 %v4787_v43, %v3809_v40 }
 0x25d   :  { %v2416_v5 = vrot.slane %v1881_v51, %v4818_v61  ;;  %v3813_v39 = vpop.eup %3812  ;;  %v2191_v28 = vsel %vm130_vm1, %v1815_v63, 0.0  ;;  %v1816_v45 = vmul.f32 %v4787_v43, %v3811_v49 }
 0x25e   :  { %v2926_v57 = vsel %vm2853_vm6, %v2676_v31, %v2925_v0  ;;  %2186 = vadd.xlane.f32.xlu0 %v2185_v8  ;;  %v3815_v11 = vpop.eup %3814  ;;  %v2173_v27 = vsel %vm130_vm1, %v1809_v60, 0.0  ;;  %v1810_v0 = vmul.f32 %v4787_v43, %v3813_v39 }
 0x25f   :  { %v1884_v20 = vpop.xlane.xlu0 %1883  ;;  %v2869_v36 = vsel %vm2851_vm5, %v2416_v5, %v2868_v16  ;;  %2000 = vadd.xlane.f32.xlu1 %v1999_v19  ;;  %v3817_v15 = vpop.eup %3816  ;;  %v2194_v50 = vsel %vm130_vm1, %v1816_v45, 0.0  ;;  %v1818_v7 = vmul.f32 %v4787_v43, %v3815_v11 }
 0x260   :  { %v2420_v22 = vrot.slane %v1884_v20, %v4818_v61  ;;  %v2082_v59 = vpop.xlane.xlu1 %2081  ;;  %v2176_v51 = vsel %vm130_vm1, %v1810_v0, 0.0  ;;  %v1817_v8 = vmul.f32 %v4787_v43, %v3817_v15 }
 0x261   :  { %v2684_v47 = vrot.slane %v2082_v59, %v4818_v61  ;;  %v2200_v5 = vsel %vm130_vm1, %v1818_v7, 0.0 }
 0x262   :  { %1994 = vadd.xlane.f32.xlu0 %v1993_v54  ;;  %v5112_v53 = vsel %vm2853_vm6, %v2420_v22, %v2869_v36  ;;  %v2197_v35 = vsel %vm130_vm1, %v1817_v8, 0.0 }
 0x263   :  { %v2079_v2 = vpop.xlane.xlu0 %2078  ;;  %2153 = vadd.xlane.f32.xlu1 %v2152_v41 }
 0x264   :  { %v2680_v32 = vrot.slane %v2079_v2, %v4818_v61  ;;  %v5116_v18 = vpop.xlane.xlu1 %1889 }
 0x266   :  { %2003 = vadd.xlane.f32.xlu0 %v2002_v55  ;;  %v2927_v3 = vsel %vm2855_vm7, %v2680_v32, %v2926_v57 }
 0x267   :  { %v5123_v58 = vpop.xlane.xlu0 %1886  ;;  %2189 = vadd.xlane.f32.xlu1 %v2188_v13  ;;  %v5126_v24 = vsel %vm2857_vm8, %v2684_v47, %v2927_v3 }
 0x268   :  { %v2088_v9 = vpop.xlane.xlu1 %2087 }
 0x269   :  { %v2692_v42 = vrot.slane %v2088_v9, %v4818_v61 }
 0x26a   :  { %2171 = vadd.xlane.f32.xlu0 %v2170_v14 }
 0x26b   :  { %v2085_v33 = vpop.xlane.xlu0 %2084  ;;  %2192 = vadd.xlane.f32.xlu1 %v2191_v28 }
 0x26c   :  { %v2688_v46 = vrot.slane %v2085_v33, %v4818_v61  ;;  %v5134_v21 = vpop.xlane.xlu1 %1895 }
 0x26e   :  { %v2929_v16 = vsel %vm2845_vm2, %v2692_v42, %v2688_v46  ;;  %2174 = vadd.xlane.f32.xlu0 %v2173_v27 }
 0x26f   :  { %v5141_v37 = vpop.xlane.xlu0 %1892  ;;  %2195 = vadd.xlane.f32.xlu1 %v2194_v50 }
 0x270   :  { %v2094_v31 = vpop.xlane.xlu1 %2093  ;;  %v2432_v8 = vrot.slane %v5141_v37, %v4818_v61 }
 0x271   :  { %v2700_v1 = vrot.slane %v2094_v31, %v4818_v61 }
 0x272   :  { %2177 = vadd.xlane.f32.xlu0 %v2176_v51  ;;  %v2436_v51 = vrot.slane %v5134_v21, %v4818_v61 }
 0x273   :  { %v2091_v38 = vpop.xlane.xlu0 %2090  ;;  %2201 = vadd.xlane.f32.xlu1 %v2200_v5 }
 0x274   :  { %v2696_v57 = vrot.slane %v2091_v38, %v4818_v61  ;;  %v5148_v19 = vpop.xlane.xlu1 %1901 }
 0x275   :  { %v2444_v21 = vrot.slane %v5148_v19, %v4818_v61 }
 0x276   :  { %v2930_v44 = vsel %vm2847_vm3, %v2696_v57, %v2929_v16  ;;  %2198 = vadd.xlane.f32.xlu0 %v2197_v35  ;;  %v2396_v57 = vrot.slane %v5024_v34, %v4818_v61 }
 0x277   :  { %v1899_v20 = vpop.xlane.xlu0 %1898  ;;  %v2931_v36 = vsel %vm2849_vm4, %v2700_v1, %v2930_v44  ;;  %v2424_v44 = vrot.slane %v5123_v58, %v4818_v61 }
 0x278   :  { %v2097_v43 = vpop.xlane.xlu1 %2096  ;;  %v2440_v5 = vrot.slane %v1899_v20, %v4818_v61  ;;  %v2865_v19 = vsel %vm2857_vm8, %v2396_v57, %v5043_v30 }
 0x279   :  { %v2704_v56 = vrot.slane %v2097_v43, %v4818_v61 }
 0x27b   :  { %v2932_v22 = vsel %vm2851_vm5, %v2704_v56, %v2931_v36  ;;  %v2100_v59 = vpop.xlane.xlu0 %2099  ;;  %v2873_v36 = vsel %vm2845_vm2, %v2436_v51, %v2432_v8 }
 0x27c   :  { %v2708_v54 = vrot.slane %v2100_v59, %v4818_v61  ;;  %v1905_v52 = vpop.xlane.xlu1 %1904  ;;  %v2874_v43 = vsel %vm2847_vm3, %v2440_v5, %v2873_v36 }
 0x27d   :  { %v2448_v37 = vrot.slane %v1905_v52, %v4818_v61  ;;  %v2428_v52 = vrot.slane %v5116_v18, %v4818_v61 }
 0x27e   :  { %v2933_v6 = vsel %vm2853_vm6, %v2708_v54, %v2932_v22 }
 0x27f   :  { %v5157_v41 = vpop.xlane.xlu0 %1907 }
 0x280   :  { %v2106_v17 = vpop.xlane.xlu1 %2105 }
 0x281   :  { %v2716_v2 = vrot.slane %v2106_v17, %v4818_v61  ;;  %v2875_v17 = vsel %vm2849_vm4, %v2444_v21, %v2874_v43 }
 0x283   :  { %v2103_v4 = vpop.xlane.xlu0 %2102 }
 0x284   :  { %v2712_v47 = vrot.slane %v2103_v4, %v4818_v61  ;;  %v5161_v32 = vpop.xlane.xlu1 %1913  ;;  %v2871_v4 = vsel %vm2855_vm7, %v2424_v44, %v5112_v53 }
 0x286   :  { %v2934_v55 = vsel %vm2855_vm7, %v2712_v47, %v2933_v6  ;;  %v2452_v6 = vrot.slane %v5157_v41, %v4818_v61 }
 0x287   :  { %v5164_v10 = vpop.xlane.xlu0 %1910  ;;  %v5167_v40 = vsel %vm2857_vm8, %v2716_v2, %v2934_v55  ;;  %v2876_v2 = vsel %vm2851_vm5, %v2448_v37, %v2875_v17 }
 0x288   :  { %v2112_v13 = vpop.xlane.xlu1 %2111  ;;  %v2456_v30 = vrot.slane %v5164_v10, %v4818_v61 }
 0x289   :  { %v2724_v63 = vrot.slane %v2112_v13, %v4818_v61 }
 0x28b   :  { %v2109_v3 = vpop.xlane.xlu0 %2108 }
 0x28c   :  { %v2720_v49 = vrot.slane %v2109_v3, %v4818_v61  ;;  %v1920_v9 = vpop.xlane.xlu1 %1919  ;;  %v2872_v3 = vsel %vm2857_vm8, %v2428_v52, %v2871_v4 }
 0x28d   :  { %v2468_v20 = vrot.slane %v1920_v9, %v4818_v61  ;;  %v2460_v9 = vrot.slane %v5161_v32, %v4818_v61 }
 0x28e   :  { %v2936_v14 = vsel %vm2845_vm2, %v2724_v63, %v2720_v49  ;;  %v2877_v49 = vsel %vm2853_vm6, %v2452_v6, %v2876_v2 }
 0x28f   :  { %v1917_v60 = vpop.xlane.xlu0 %1916 }
 0x290   :  { %v2118_v39 = vpop.xlane.xlu1 %2117  ;;  %v2464_v56 = vrot.slane %v1917_v60, %v4818_v61 }
 0x291   :  { %v2732_v42 = vrot.slane %v2118_v39, %v4818_v61 }
 0x293   :  { %v2115_v28 = vpop.xlane.xlu0 %2114 }
 0x294   :  { %v2728_v45 = vrot.slane %v2115_v28, %v4818_v61  ;;  %v1926_v11 = vpop.xlane.xlu1 %1925 }
 0x295   :  { %v2476_v47 = vrot.slane %v1926_v11, %v4818_v61 }
 0x296   :  { %v2937_v33 = vsel %vm2847_vm3, %v2728_v45, %v2936_v14  ;;  %v2878_v45 = vsel %vm2855_vm7, %v2456_v30, %v2877_v49 }
 0x297   :  { %v1923_v46 = vpop.xlane.xlu0 %1922  ;;  %v2938_v27 = vsel %vm2849_vm4, %v2732_v42, %v2937_v33 }
 0x298   :  { %v2121_v0 = vpop.xlane.xlu1 %2120  ;;  %v2472_v22 = vrot.slane %v1923_v46, %v4818_v61 }
 0x299   :  { %v2736_v15 = vrot.slane %v2121_v0, %v4818_v61 }
 0x29b   :  { %v2939_v16 = vsel %vm2851_vm5, %v2736_v15, %v2938_v27  ;;  %v2124_v50 = vpop.xlane.xlu0 %2123  ;;  %v2879_v27 = vsel %vm2857_vm8, %v2460_v9, %v2878_v45 }
 0x29c   :  { %v2740_v7 = vrot.slane %v2124_v50, %v4818_v61  ;;  %v1929_v31 = vpop.xlane.xlu1 %1928 }
 0x29d   :  { %v2480_v41 = vrot.slane %v1929_v31, %v4818_v61 }
 0x29e   :  { %v2940_v1 = vsel %vm2853_vm6, %v2740_v7, %v2939_v16 }
 0x29f   :  { %v1932_v38 = vpop.xlane.xlu0 %1931 }
 0x2a0   :  { %v2130_v35 = vpop.xlane.xlu1 %2129  ;;  %v2484_v14 = vrot.slane %v1932_v38, %v4818_v61 }
 0x2a1   :  { %v2748_v59 = vrot.slane %v2130_v35, %v4818_v61 }
 0x2a3   :  { %v2127_v34 = vpop.xlane.xlu0 %2126  ;;  %2980 = vxpose.xlu0.b32.start [1/16] (narrow) %v4949_v48, 8  ;;  %v2880_v48 = vsel %vm2845_vm2, %v2468_v20, %v2464_v56 }
 0x2a4   :  { %v2744_v58 = vrot.slane %v2127_v34, %v4818_v61  ;;  %v1938_v54 = vpop.xlane.xlu1 %1937  ;;  %v2881_v18 = vsel %vm2847_vm3, %v2472_v22, %v2880_v48 }
 0x2a5   :  { %v2882_v10 = vsel %vm2849_vm4, %v2476_v47, %v2881_v18  ;;  %v2492_v46 = vrot.slane %v1938_v54, %v4818_v61 }
 0x2a6   :  { %v2941_v55 = vsel %vm2855_vm7, %v2744_v58, %v2940_v1  ;;  %v2883_v39 = vsel %vm2851_vm5, %v2480_v41, %v2882_v10 }
 0x2a7   :  { %v1935_v13 = vpop.xlane.xlu0 %1934  ;;  %2981 = vxpose.xlu0.b32.cont [2/16] (narrow) %v2865_v19, 8  ;;  %v5218_v63 = vsel %vm2857_vm8, %v2748_v59, %v2941_v55  ;;  %v2884_v0 = vsel %vm2853_vm6, %v2484_v14, %v2883_v39 }
 0x2a8   :  { %v2136_v53 = vpop.xlane.xlu1 %2135  ;;  %v2488_v42 = vrot.slane %v1935_v13, %v4818_v61 }
 0x2a9   :  { %v2756_v60 = vrot.slane %v2136_v53, %v4818_v61 }
 0x2aa   :  { %v2885_v16 = vsel %vm2855_vm7, %v2488_v42, %v2884_v0 }
 0x2ab   :  { %v2133_v28 = vpop.xlane.xlu0 %2132  ;;  %2982 = vxpose.xlu0.b32.cont [3/16] (narrow) %v2872_v3, 8  ;;  %v2886_v7 = vsel %vm2857_vm8, %v2492_v46, %v2885_v16 }
 0x2ac   :  { %v2752_v11 = vrot.slane %v2133_v28, %v4818_v61  ;;  %v1944_v33 = vpop.xlane.xlu1 %1943 }
 0x2ad   :  { %v2500_v20 = vrot.slane %v1944_v33, %v4818_v61 }
 0x2ae   :  { %v2943_v32 = vsel %vm2845_vm2, %v2756_v60, %v2752_v11 }
 0x2af   :  { %v1941_v15 = vpop.xlane.xlu0 %1940  ;;  %2983 = vxpose.xlu0.b32.cont [4/16] (narrow) %v2879_v27, 8 }
 0x2b0   :  { %v2142_v50 = vpop.xlane.xlu1 %2141  ;;  %v2496_v56 = vrot.slane %v1941_v15, %v4818_v61 }
 0x2b1   :  { %v2764_v31 = vrot.slane %v2142_v50, %v4818_v61 }
 0x2b2   :  { %v2887_v54 = vsel %vm2845_vm2, %v2500_v20, %v2496_v56 }
 0x2b3   :  { %v2139_v51 = vpop.xlane.xlu0 %2138  ;;  %2984 = vxpose.xlu0.b32.cont [5/16] (narrow) %v2886_v7, 8 }
 0x2b4   :  { %v2760_v8 = vrot.slane %v2139_v51, %v4818_v61  ;;  %v1950_v5 = vpop.xlane.xlu1 %1949 }
 0x2b5   :  { %v2508_v19 = vrot.slane %v1950_v5, %v4818_v61 }
 0x2b6   :  { %v2944_v1 = vsel %vm2847_vm3, %v2760_v8, %v2943_v32 }
 0x2b7   :  { %v1947_v38 = vpop.xlane.xlu0 %1946  ;;  %v2945_v57 = vsel %vm2849_vm4, %v2764_v31, %v2944_v1 }
 0x2b8   :  { %v2145_v35 = vpop.xlane.xlu1 %2144  ;;  %v2504_v22 = vrot.slane %v1947_v38, %v4818_v61 }
 0x2b9   :  { %v2768_v44 = vrot.slane %v2145_v35, %v4818_v61 }
 0x2ba   :  { %v2888_v52 = vsel %vm2847_vm3, %v2504_v22, %v2887_v54 }
 0x2bb   :  { %v2946_v36 = vsel %vm2851_vm5, %v2768_v44, %v2945_v57  ;;  %v2148_v21 = vpop.xlane.xlu0 %2147  ;;  %v2889_v47 = vsel %vm2849_vm4, %v2508_v19, %v2888_v52 }
 0x2bc   :  { %v2772_v43 = vrot.slane %v2148_v21, %v4818_v61  ;;  %v1953_v37 = vpop.xlane.xlu1 %1952 }
 0x2bd   :  { %v2512_v6 = vrot.slane %v1953_v37, %v4818_v61 }
 0x2be   :  { %v2947_v34 = vsel %vm2853_vm6, %v2772_v43, %v2946_v36 }
 0x2bf   :  { %v1956_v59 = vpop.xlane.xlu0 %1955  ;;  %v2890_v55 = vsel %vm2851_vm5, %v2512_v6, %v2889_v47 }
 0x2c0   :  { %v1962_v58 = vpop.xlane.xlu1 %1961  ;;  %v2516_v48 = vrot.slane %v1956_v59, %v4818_v61 }
 0x2c1   :  { %v2524_v53 = vrot.slane %v1962_v58, %v4818_v61 }
 0x2c2   :  { %v2891_v3 = vsel %vm2853_vm6, %v2516_v48, %v2890_v55 }
 0x2c3   :  { %v2151_v17 = vpop.xlane.xlu0 %2150 }
 0x2c4   :  { %v2776_v4 = vrot.slane %v2151_v17, %v4818_v61  ;;  %v2160_v2 = vpop.xlane.xlu1 %2159 }
 0x2c5   :  { %v2788_v10 = vrot.slane %v2160_v2, %v4818_v61 }
 0x2c6   :  { %v5257_v30 = vsel %vm2855_vm7, %v2776_v4, %v2947_v34 }
 0x2c7   :  { %v1959_v18 = vpop.xlane.xlu0 %1958 }
 0x2c8   :  { %v2520_v41 = vrot.slane %v1959_v18, %v4818_v61  ;;  %v1968_v13 = vpop.xlane.xlu1 %1967 }
 0x2c9   :  { %v2532_v32 = vrot.slane %v1968_v13, %v4818_v61  ;;  %v2584_v13 = vrot.slane %v4868_v62, %v4818_v61 }
 0x2ca   :  { %v2892_v49 = vsel %vm2855_vm7, %v2520_v41, %v2891_v3 }
 0x2cb   :  { %v2157_v9 = vpop.xlane.xlu0 %2156  ;;  %v2893_v14 = vsel %vm2857_vm8, %v2524_v53, %v2892_v49  ;;  %v2588_v53 = vrot.slane %v4832_v25, %v4818_v61 }
 0x2cc   :  { %v2784_v60 = vrot.slane %v2157_v9, %v4818_v61  ;;  %2985 = vxpose.xlu0.b32.cont [6/16] (narrow) %v2893_v14, 8  ;;  %v5266_v39 = vpop.xlane.xlu1 %2165  ;;  %v2648_v14 = vrot.slane %v5020_v12, %v4818_v61 }
 0x2ce   :  { %v5269_v42 = vsel %vm2845_vm2, %v2788_v10, %v2784_v60  ;;  %v2652_v60 = vrot.slane %v5011_v29, %v4818_v61  ;;  %v2920_v25 = vsel %vm2855_vm7, %v2648_v14, %v5005_v26 }
 0x2cf   :  { %v1965_v28 = vpop.xlane.xlu0 %1964 }
 0x2d0   :  { %v1974_v45 = vpop.xlane.xlu1 %1973  ;;  %v2528_v46 = vrot.slane %v1965_v28, %v4818_v61 }
 0x2d1   :  { %v2540_v31 = vrot.slane %v1974_v45, %v4818_v61  ;;  %v2921_v45 = vsel %vm2857_vm8, %v2652_v60, %v2920_v25 }
 0x2d2   :  { %v2894_v16 = vsel %vm2845_vm2, %v2532_v32, %v2528_v46 }
 0x2d3   :  { %v5271_v11 = vpop.xlane.xlu0 %2162 }
 0x2d4   :  { %v5273_v33 = vpop.xlane.xlu1 %2168  ;;  %v2792_v12 = vrot.slane %v5271_v11, %v4818_v61 }
 0x2d7   :  { %v1971_v27 = vpop.xlane.xlu0 %1970 }
 0x2d8   :  { %v2536_v0 = vrot.slane %v1971_v27, %v4818_v61  ;;  %v1977_v15 = vpop.xlane.xlu1 %1976 }
 0x2d9   :  { %v2544_v7 = vrot.slane %v1977_v15, %v4818_v61 }
 0x2da   :  { %v2895_v50 = vsel %vm2847_vm3, %v2536_v0, %v2894_v16  ;;  %v2796_v16 = vrot.slane %v5266_v39, %v4818_v61 }
 0x2db   :  { %v1980_v51 = vpop.xlane.xlu0 %1979  ;;  %v2896_v1 = vsel %vm2849_vm4, %v2540_v31, %v2895_v50 }
 0x2dc   :  { %v1986_v8 = vpop.xlane.xlu1 %1985  ;;  %v2548_v5 = vrot.slane %v1980_v51, %v4818_v61  ;;  %v2897_v38 = vsel %vm2851_vm5, %v2544_v7, %v2896_v1 }
 0x2dd   :  { %v2556_v57 = vrot.slane %v1986_v8, %v4818_v61 }
 0x2de   :  { %v2898_v21 = vsel %vm2853_vm6, %v2548_v5, %v2897_v38 }
 0x2df   :  { %v1983_v35 = vpop.xlane.xlu0 %1982 }
 0x2e0   :  { %v2552_v44 = vrot.slane %v1983_v35, %v4818_v61  ;;  %v2184_v36 = vpop.xlane.xlu1 %2183 }
 0x2e1   :  { %v2820_v26 = vrot.slane %v2184_v36, %v4818_v61 }
 0x2e2   :  { %v2899_v43 = vsel %vm2855_vm7, %v2552_v44, %v2898_v21 }
 0x2e3   :  { %v2181_v37 = vpop.xlane.xlu0 %2180  ;;  %v2900_v20 = vsel %vm2857_vm8, %v2556_v57, %v2899_v43 }
 0x2e4   :  { %2986 = vxpose.xlu0.b32.cont [7/16] (narrow) %v2900_v20, 8  ;;  %v1992_v56 = vpop.xlane.xlu1 %1991  ;;  %v2816_v0 = vrot.slane %v2181_v37, %v4818_v61 }
 0x2e5   :  { %v2564_v58 = vrot.slane %v1992_v56, %v4818_v61 }
 0x2e6   :  { %v2957_v39 = vsel %vm2845_vm2, %v2820_v26, %v2816_v0 }
 0x2e7   :  { %v1989_v22 = vpop.xlane.xlu0 %1988 }
 0x2e8   :  { %v1998_v34 = vpop.xlane.xlu1 %1997  ;;  %v2560_v54 = vrot.slane %v1989_v22, %v4818_v61  ;;  %v3013_v22 = vld [vmem:[#allocation14] sm:$0xff] }
 0x2e9   :  { %v2572_v4 = vrot.slane %v1998_v34, %v4818_v61 }
 0x2ea   :  { %v2901_v17 = vsel %vm2845_vm2, %v2564_v58, %v2560_v54 }
 0x2eb   :  { %v2187_v59 = vpop.xlane.xlu0 %2186 }
 0x2ec   :  { %v2001_v52 = vpop.xlane.xlu1 %2000  ;;  %v2824_v11 = vrot.slane %v2187_v59, %v4818_v61 }
 0x2ed   :  { %v2576_v48 = vrot.slane %v2001_v52, %v4818_v61 }
 0x2ee   :  { %v2958_v1 = vsel %vm2847_vm3, %v2824_v11, %v2957_v39 }
 0x2ef   :  { %v1995_v19 = vpop.xlane.xlu0 %1994 }
 0x2f0   :  { %v2568_v6 = vrot.slane %v1995_v19, %v4818_v61  ;;  %v2154_v10 = vpop.xlane.xlu1 %2153 }
 0x2f1   :  { %v2780_v15 = vrot.slane %v2154_v10, %v4818_v61 }
 0x2f2   :  { %v2902_v2 = vsel %vm2847_vm3, %v2568_v6, %v2901_v17 }
 0x2f3   :  { %v2903_v47 = vsel %vm2849_vm4, %v2572_v4, %v2902_v2  ;;  %v2004_v55 = vpop.xlane.xlu0 %2003 }
 0x2f4   :  { %v2904_v18 = vsel %vm2851_vm5, %v2576_v48, %v2903_v47  ;;  %v2580_v41 = vrot.slane %v2004_v55, %v4818_v61  ;;  %v2190_v62 = vpop.xlane.xlu1 %2189 }
 0x2f6   :  { %v2905_v3 = vsel %vm2853_vm6, %v2580_v41, %v2904_v18 }
 0x2f7   :  { %v2906_v49 = vsel %vm2855_vm7, %v2584_v13, %v2905_v3  ;;  %v2172_v28 = vpop.xlane.xlu0 %2171 }
 0x2f8   :  { %v2907_v9 = vsel %vm2857_vm8, %v2588_v53, %v2906_v49  ;;  %v2193_v32 = vpop.xlane.xlu1 %2192 }
 0x2f9   :  { %2987 = vxpose.xlu0.b32.cont [8/16] (narrow) %v2907_v9, 8  ;;  %v2832_v51 = vrot.slane %v2193_v32, %v4818_v61 }
 0x2fb   :  { %v2175_v46 = vpop.xlane.xlu0 %2174 }
 0x2fc   :  { %v2196_v29 = vpop.xlane.xlu1 %2195  ;;  %v2808_v31 = vrot.slane %v2175_v46, %v4818_v61 }
 0x2fd   :  { %2988 = vxpose.xlu0.b32.cont [9/16] (narrow) %v4932_v23, 8  ;;  %v2951_v23 = vsel %vm2847_vm3, %v2792_v12, %v5269_v42  ;;  %v2828_v42 = vrot.slane %v2190_v62, %v4818_v61 }
 0x2fe   :  { %v2952_v7 = vsel %vm2849_vm4, %v2796_v16, %v2951_v23 }
 0x2ff   :  { %v2178_v27 = vpop.xlane.xlu0 %2177  ;;  %v2959_v44 = vsel %vm2849_vm4, %v2828_v42, %v2958_v1 }
 0x300   :  { %v2812_v8 = vrot.slane %v2178_v27, %v4818_v61  ;;  %v2202_v57 = vpop.xlane.xlu1 %2201  ;;  %v2960_v36 = vsel %vm2851_vm5, %v2832_v51, %v2959_v44 }
 0x301   :  { %2989 = vxpose.xlu0.b32.cont [10/16] (narrow) %v2921_v45, 8 }
 0x303   :  { %v2199_v50 = vpop.xlane.xlu0 %2198 }
 0x304   :  { %v2840_v38 = vrot.slane %v2199_v50, %v4818_v61 }
 0x305   :  { %2990 = vxpose.xlu0.b32.cont [11/16] (narrow) %v5126_v24, 8  ;;  %v2800_v24 = vrot.slane %v5273_v33, %v4818_v61  ;;  %v2836_v33 = vrot.slane %v2196_v29, %v4818_v61 }
 0x307   :  { %v2953_v5 = vsel %vm2851_vm5, %v2800_v24, %v2952_v7  ;;  %v2961_v43 = vsel %vm2853_vm6, %v2836_v33, %v2960_v36 }
 0x308   :  { %v2962_v20 = vsel %vm2855_vm7, %v2840_v38, %v2961_v43 }
 0x309   :  { %2991 = vxpose.xlu0.b32.cont [12/16] (narrow) %v5167_v40, 8  ;;  %v2804_v40 = vrot.slane %v2172_v28, %v4818_v61 }
 0x30b   :  { %v2954_v35 = vsel %vm2853_vm6, %v2804_v40, %v2953_v5 }
 0x30c   :  { %v2955_v21 = vsel %vm2855_vm7, %v2808_v31, %v2954_v35 }
 0x30d   :  { %2992 = vxpose.xlu0.b32.cont [13/16] (narrow) %v5218_v63, 8  ;;  %v2949_v63 = vsel %vm2857_vm8, %v2780_v15, %v5257_v30  ;;  %v2844_v30 = vrot.slane %v2202_v57, %v4818_v61  ;;  %v2956_v37 = vsel %vm2857_vm8, %v2812_v8, %v2955_v21 }
 0x30f   :  { %v2963_v56 = vsel %vm2857_vm8, %v2844_v30, %v2962_v20 }
 0x311   :  { %2993 = vxpose.xlu0.b32.cont [14/16] (narrow) %v2949_v63, 8 }
 0x315   :  { %2994 = vxpose.xlu0.b32.cont [15/16] (narrow) %v2956_v37, 8 }
 0x319   :  { %2995 = vxpose.xlu0.b32.end [16/16] (narrow) %v2963_v56, 8 }
 0x35d   :  { %v2996_v34 = vpop.trf.xlu0 }
 0x35e   :  { %v3014_v59 = vadd.f32 %v3013_v22, %v2996_v34 }
 0x360   :  { %3023 = vmax.xlane.f32.xlu1 %v3014_v59 }
 0x3ed   :  { %v3024_v58 = vpop.xlane.xlu1 %3023 }
 0x3ee   :  { %v3025_v54 = vsub.f32 %v3014_v59, %v3024_v58 }
 0x3f0   :  { %v3026_v19 = vmul.f32 1.442695, %v3025_v54 }
 0x3f2   :  { %3818 = vpow2.f32 %v3026_v19 }
 0x3fc   :  { %v3819_v52 = vpop.eup %3818 }
 0x3fd   :  { %3028 = vadd.xlane.f32.xlu1 %v3819_v52 }
 0x48a   :  { %v3029_v6 = vpop.xlane.xlu1 %3028 }
 0x48b   :  { %3820 = vrcp.f32 %v3029_v6 }
 0x495   :  { %v3821_v61 = vpop.eup %3820 }
 0x496   :  { %v3031_v17 = vmul.f32 %v3821_v61, %v3819_v52 }
 0x498   :  { %3032 = vst [vmem:[#allocation15] sm:$0xff] %v3031_v17 }
 0x499   :  { %3989 = shalt.err (!%p3986_p4)
}
 0x49a   :  { %s3990_s14 = scalar_lea.hbm %s5371_s7, 128 }
 0x49b   :  { %p3991_p5 = scmp.ne.s32.totalorder %s5371_s7, %s3990_s14  ;;  %p3994_p6 = scmp.lt.u32.totalorder %s3990_s14, %s5371_s7 }
 0x49d   :  { %p3996_p7 = pnand %p3994_p6, %p3991_p5 }
 0x49f   :  { %3999 = shalt.err (!%p3996_p7)
}
 0x4a0   :  { %3042 = dma.vmem_to_hbm [thread:$0]  %s3040_s12, 128, %s5371_s7, [#allocation5]  }
 0x4a1   :  { %4008 = dma.done.wait [#allocation5], 128  }
 0x4a2   :  { %4009 = vsyncadd [#allocation5], 4294967168 }
 0x4a3   :  { %3046 = vsyncpa [#allocation4], 1 }
 0x4a4   :  { %3047 = vsyncpa [#allocation7], 1 }
 0x4a5   :  { %3048 = vsyncpa [#allocation10], 1 }
 0x4a6   :  { %3049 = vsyncpa [#allocation13], 1 }
 0x4a7   :  { %3050 = vsyncpa [#allocation5], 1 }

</bundles_post_ra>
